<compile_context>
chip_gen: v6e
topology: v6e:2x2x1
jax: 0.10.0
libtpu: 0.0.40
codegen_flags: <defaults>
</compile_context>

<pallas_src>
import functools

import jax
import jax.numpy as jnp
from jax.experimental import pallas as pl
from jax.experimental.pallas import tpu as pltpu

D_IN = 784
D_H = 400
D_Z = 20
D_ZP = 128          # latent dims padded to one full 128-lane vreg


def _round_up(n, m):
    return ((n + m - 1) // m) * m


def _vae_kernel(x_ref, eps_ref,
                w1_ref, b1_ref,
                wml_ref, bml_ref,
                w3_ref, b3_ref,
                w4_ref, b4_ref,
                recon_ref, ml_ref,
                eps_buf):
    bf16 = jnp.bfloat16
    f32 = jnp.float32

    # ---- encode: fc1 + ReLU (bf16 MXU operands, f32 accumulate/elementwise) ----
    h1 = jnp.dot(x_ref[...], w1_ref[...], preferred_element_type=f32) + b1_ref[...]
    h1 = jnp.maximum(h1, 0.0)                                     # (TB, 400) f32

    # ---- fused logvar|mu projection: one 128-lane MXU output ----
    # lanes 0:20 = logvar, lanes 20:40 = mu, lanes 40:128 = exactly 0
    ml = jnp.dot(h1.astype(bf16), wml_ref[...],
                 preferred_element_type=f32) + bml_ref[...]       # (TB, 128) f32

    # ---- zero-extend eps (TB, 20) to 128 lanes via VMEM scratch ----
    eps_buf[...] = jnp.zeros_like(eps_buf)
    eps_buf[:, :D_Z] = eps_ref[...]                               # eps -> lanes 0:20

    # ---- reparametrization, kept in split-lane form ----
    # noise lanes 0:20 = eps * (0.5 * exp(logvar)); z_p lanes 20:40 = mu; rest 0.
    # fc3 weights are duplicated in w3p rows 0:20 and 20:40, so
    #   z_p @ w3p == (mu + eps * 0.5 * exp(logvar)) @ fc3_w   (no lane roll needed)
    lane = jax.lax.broadcasted_iota(jnp.int32, ml.shape, 1)
    in_lv = lane < D_Z
    noise = eps_buf[...] * (0.5 * jnp.exp(jnp.where(in_lv, ml, 0.0)))
    z_p = jnp.where(in_lv, noise, ml)                             # (TB, 128) f32

    # ---- decode: fc3 + ReLU, fc4 + sigmoid ----
    h3 = jnp.dot(z_p.astype(bf16), w3_ref[...],
                 preferred_element_type=f32) + b3_ref[...]
    h3 = jnp.maximum(h3, 0.0)                                     # (TB, 400) f32
    logits = jnp.dot(h3.astype(bf16), w4_ref[...],
                     preferred_element_type=f32) + b4_ref[...]

    recon_ref[...] = jax.nn.sigmoid(logits).astype(recon_ref.dtype)  # bf16 store
    ml_ref[...] = ml                                              # lane-dense f32


@functools.partial(jax.jit, static_argnames=("tb",))
def vae_forward(x, eps, kparams, tb=512):
    """x: (B, 784) (bf16 preferred), eps: (B, 20) f32 standard-normal noise.

    tb: max batch tile (512 is a good default on v5e/v6e/v7x; the wrapper also
    splits the batch into >= 2 grid steps so the 'parallel' axis can shard
    across v7x's two TensorCores).
    Returns (reconstruction (B,784) bf16, mu (B,20) f32, logvar (B,20) f32).
    """
    B = x.shape[0]
    if x.dtype != jnp.bfloat16:
        # Producers should hand bf16 directly; this cast is a fallback.
        x = x.astype(jnp.bfloat16)
    eps = eps.astype(jnp.float32)

    if B < 8:
        tb_eff = B                                  # full-dim (sub-8-row) block
    else:
        two_way = _round_up((B + 1) // 2, 8)        # >= 2 grid steps when possible
        tb_eff = max(8, min(tb, two_way))
    grid = (pl.cdiv(B, tb_eff),)

    def batch_spec(d):
        return pl.BlockSpec((tb_eff, d), lambda i: (i, 0))

    def resident_spec(a):
        # same block index every grid step -> fetched once, stays in VMEM
        return pl.BlockSpec(a.shape, lambda i: (0, 0))

    args = (x, eps,
            kparams["w1"], kparams["b1"],
            kparams["wml"], kparams["bml"],
            kparams["w3"], kparams["b3"],
            kparams["w4"], kparams["b4"])

    in_specs = [batch_spec(D_IN), batch_spec(D_Z)] + \
               [resident_spec(a) for a in args[2:]]

    weight_bytes = 2 * (D_IN * D_H + D_H * D_ZP + D_ZP * D_H + D_H * D_IN) \
        + 4 * (D_H + D_ZP + D_H + D_IN)
    cost = pl.CostEstimate(
        flops=2 * B * (D_IN * D_H + D_H * D_ZP + D_ZP * D_H + D_H * D_IN),
        transcendentals=B * (D_ZP + D_IN),
        bytes_accessed=B * (2 * D_IN + 4 * D_Z + 2 * D_IN + 4 * D_ZP) + weight_bytes,
    )

    recon, ml = pl.pallas_call(
        _vae_kernel,
        grid=grid,
        in_specs=in_specs,
        out_specs=(batch_spec(D_IN), batch_spec(D_ZP)),
        out_shape=(
            jax.ShapeDtypeStruct((B, D_IN), jnp.bfloat16),   # reconstruction (bf16)
            jax.ShapeDtypeStruct((B, D_ZP), jnp.float32),    # logvar | mu (packed)
        ),
        scratch_shapes=[pltpu.VMEM((tb_eff, D_ZP), jnp.float32)],  # eps extension
        compiler_params=pltpu.CompilerParams(
            dimension_semantics=("parallel",),
            vmem_limit_bytes=40 << 20,
        ),
        cost_estimate=cost,
    )(*args)

    logvar = ml[:, :D_Z]
    mu = ml[:, D_Z:2 * D_Z]
    return recon, mu, logvar


def init_raw_params(key):
    """Deterministic init matching nn.Linear (weights transposed to (in, out))."""
    ks = jax.random.split(key, 10)

    def lin(kw, kb, fan_in, fan_out):
        bound = 1.0 / jnp.sqrt(fan_in)
        w = jax.random.uniform(kw, (fan_in, fan_out), jnp.float32, -bound, bound)
        b = jax.random.uniform(kb, (1, fan_out), jnp.float32, -bound, bound)
        return w, b

    w1, b1 = lin(ks[0], ks[1], D_IN, D_H)    # fc1
    wm, bm = lin(ks[2], ks[3], D_H, D_Z)     # fc2_mean
    wl, bl = lin(ks[4], ks[5], D_H, D_Z)     # fc2_logvar
    w3, b3 = lin(ks[6], ks[7], D_Z, D_H)     # fc3
    w4, b4 = lin(ks[8], ks[9], D_H, D_IN)    # fc4
    return dict(w1=w1, b1=b1, wm=wm, bm=bm, wl=wl, bl=bl,
                w3=w3, b3=b3, w4=w4, b4=b4)


def pack_params(p):
    """Fuse mean/logvar projections into one 128-lane head
    (lanes 0:20 = logvar, 20:40 = mu), duplicate fc3 weights into rows 0:20 and
    20:40 of the 128-row padded w3 (so the split-lane z needs no roll), and cast
    MXU weights to bf16 (biases stay f32 for the f32 element-wise path)."""
    bf16 = jnp.bfloat16
    wml = jnp.zeros((D_H, D_ZP), jnp.float32)
    wml = wml.at[:, :D_Z].set(p["wl"]).at[:, D_Z:2 * D_Z].set(p["wm"])
    bml = jnp.zeros((1, D_ZP), jnp.float32)
    bml = bml.at[:, :D_Z].set(p["bl"]).at[:, D_Z:2 * D_Z].set(p["bm"])
    w3p = jnp.zeros((D_ZP, D_H), jnp.float32)
    w3p = w3p.at[:D_Z, :].set(p["w3"]).at[D_Z:2 * D_Z, :].set(p["w3"])
    return dict(
        w1=p["w1"].astype(bf16), b1=p["b1"],
        wml=wml.astype(bf16), bml=bml,
        w3=w3p.astype(bf16), b3=p["b3"],
        w4=p["w4"].astype(bf16), b4=p["b4"],
    )


def vae_forward_f32_ref(x, eps, p):
    """Pure-f32 JAX reference of the module semantics."""
    h1 = jnp.maximum(x @ p["w1"] + p["b1"], 0.0)
    mu = h1 @ p["wm"] + p["bm"]
    logvar = h1 @ p["wl"] + p["bl"]
    z = eps * (0.5 * jnp.exp(logvar)) + mu
    h3 = jnp.maximum(z @ p["w3"] + p["b3"], 0.0)
    recon = jax.nn.sigmoid(h3 @ p["w4"] + p["b4"])
    return recon, mu, logvar


def vae_forward_bf16_ref(x, eps, p):
    """Reference using the same bf16 matmul operands / f32 accumulation as the
    kernel (for a tight numerical check)."""
    bf16, f32 = jnp.bfloat16, jnp.float32

    def d(a, w):
        return jnp.dot(a.astype(bf16), w.astype(bf16), preferred_element_type=f32)

    h1 = jnp.maximum(d(x, p["w1"]) + p["b1"], 0.0)
    mu = d(h1, p["wm"]) + p["bm"]
    logvar = d(h1, p["wl"]) + p["bl"]
    z = eps * (0.5 * jnp.exp(logvar)) + mu
    h3 = jnp.maximum(d(z, p["w3"]) + p["b3"], 0.0)
    recon = jax.nn.sigmoid(d(h3, p["w4"]) + p["b4"])
    return recon, mu, logvar


if __name__ == "__main__":
    key = jax.random.PRNGKey(0)
    k_param, k_x, k_eps = jax.random.split(key, 3)

    B = 32
    raw = init_raw_params(k_param)
    kparams = pack_params(raw)
    # Producer hands bf16 "images" directly (kernel consumes x in bf16).
    x = jax.random.uniform(k_x, (B, D_IN), jnp.float32).astype(jnp.bfloat16)
    eps = jax.random.normal(k_eps, (B, D_Z), jnp.float32)     # reparam noise

    # Default tb=512 -> the wrapper splits B=32 into 2 grid steps (tb_eff=16),
    # exercising the multi-step pipelined grid.
    recon, mu, logvar = jax.block_until_ready(vae_forward(x, eps, kparams))

    assert recon.shape == (B, D_IN) and recon.dtype == jnp.bfloat16
    assert mu.shape == (B, D_Z) and logvar.shape == (B, D_Z)

    recon_f = recon.astype(jnp.float32)

    # tight check against a reference using the same bf16 MXU operands
    r_b, mu_b, lv_b = vae_forward_bf16_ref(x, eps, raw)
    assert jnp.allclose(mu, mu_b, atol=2e-3, rtol=2e-3)
    assert jnp.allclose(logvar, lv_b, atol=2e-3, rtol=2e-3)
    assert jnp.allclose(recon_f, r_b, atol=2e-2, rtol=2e-2)     # recon is bf16-quantized

    # loose sanity check against the pure-f32 module semantics
    r_f, mu_f, lv_f = vae_forward_f32_ref(x.astype(jnp.float32), eps, raw)
    assert jnp.allclose(recon_f, r_f, atol=6e-2, rtol=6e-2)
    assert jnp.allclose(mu, mu_f, atol=5e-2, rtol=5e-2)
    assert jnp.allclose(logvar, lv_f, atol=5e-2, rtol=5e-2)

    print("KERNEL_OK")
</pallas_src>

<mosaic_0001>
module attributes {stable_mosaic.version = 11 : i64} {
  func.func @_vae_kernel(%arg0: i32, %arg1: memref<16x784xbf16, #tpu.memory_space<vmem>>, %arg2: memref<16x20xf32, #tpu.memory_space<vmem>>, %arg3: memref<784x400xbf16, #tpu.memory_space<vmem>>, %arg4: memref<1x400xf32, #tpu.memory_space<vmem>>, %arg5: memref<400x128xbf16, #tpu.memory_space<vmem>>, %arg6: memref<1x128xf32, #tpu.memory_space<vmem>>, %arg7: memref<128x400xbf16, #tpu.memory_space<vmem>>, %arg8: memref<1x400xf32, #tpu.memory_space<vmem>>, %arg9: memref<400x784xbf16, #tpu.memory_space<vmem>>, %arg10: memref<1x784xf32, #tpu.memory_space<vmem>>, %arg11: memref<16x784xbf16, #tpu.memory_space<vmem>>, %arg12: memref<16x128xf32, #tpu.memory_space<vmem>>, %arg13: memref<16x128xf32, #tpu.memory_space<vmem>>) attributes {dimension_semantics = [#tpu.dimension_semantics<parallel>], iteration_bounds = array<i64: 2>, scalar_prefetch = 0 : i64, scratch_operands = 1 : i64, tpu.core_type = #tpu.core_type<tc>, window_params = [{transform_indices = @transform_0, window_bounds = array<i64: 16, 784>}, {transform_indices = @transform_1, window_bounds = array<i64: 16, 20>}, {pipeline_mode = #tpu.pipeline_mode<synchronous>, transform_indices = @transform_2, window_bounds = array<i64: 784, 400>}, {pipeline_mode = #tpu.pipeline_mode<synchronous>, transform_indices = @transform_3, window_bounds = array<i64: 1, 400>}, {pipeline_mode = #tpu.pipeline_mode<synchronous>, transform_indices = @transform_4, window_bounds = array<i64: 400, 128>}, {pipeline_mode = #tpu.pipeline_mode<synchronous>, transform_indices = @transform_5, window_bounds = array<i64: 1, 128>}, {pipeline_mode = #tpu.pipeline_mode<synchronous>, transform_indices = @transform_6, window_bounds = array<i64: 128, 400>}, {pipeline_mode = #tpu.pipeline_mode<synchronous>, transform_indices = @transform_7, window_bounds = array<i64: 1, 400>}, {pipeline_mode = #tpu.pipeline_mode<synchronous>, transform_indices = @transform_8, window_bounds = array<i64: 400, 784>}, {pipeline_mode = #tpu.pipeline_mode<synchronous>, transform_indices = @transform_9, window_bounds = array<i64: 1, 784>}, {transform_indices = @transform_10, window_bounds = array<i64: 16, 784>}, {transform_indices = @transform_11, window_bounds = array<i64: 16, 128>}]} {
    %c0 = arith.constant 0 : index
    %c0_0 = arith.constant 0 : index
    %0 = vector.load %arg1[%c0, %c0_0] : memref<16x784xbf16, #tpu.memory_space<vmem>>, vector<16x784xbf16>
    %c0_1 = arith.constant 0 : index
    %c0_2 = arith.constant 0 : index
    %1 = vector.load %arg3[%c0_1, %c0_2] : memref<784x400xbf16, #tpu.memory_space<vmem>>, vector<784x400xbf16>
    %cst = arith.constant dense<0.000000e+00> : vector<16x400xf32>
    %2 = tpu.matmul %0, %1, %cst {dimension_numbers = #tpu.dot_dimension_numbers<[1], [0], [0], [1], [0, 0, 1, 1], [], []>} : vector<16x784xbf16>, vector<784x400xbf16>, vector<16x400xf32> -> vector<16x400xf32>
    %c0_3 = arith.constant 0 : index
    %c0_4 = arith.constant 0 : index
    %3 = vector.load %arg4[%c0_3, %c0_4] : memref<1x400xf32, #tpu.memory_space<vmem>>, vector<1x400xf32>
    %4 = vector.broadcast %3 : vector<1x400xf32> to vector<16x400xf32>
    %5 = arith.addf %2, %4 : vector<16x400xf32>
    %cst_5 = arith.constant 0.000000e+00 : f32
    %6 = vector.broadcast %cst_5 : f32 to vector<16x400xf32>
    %7 = arith.maximumf %5, %6 : vector<16x400xf32>
    %8 = arith.truncf %7 : vector<16x400xf32> to vector<16x400xbf16>
    %c0_6 = arith.constant 0 : index
    %c0_7 = arith.constant 0 : index
    %9 = vector.load %arg5[%c0_6, %c0_7] : memref<400x128xbf16, #tpu.memory_space<vmem>>, vector<400x128xbf16>
    %cst_8 = arith.constant dense<0.000000e+00> : vector<16x128xf32>
    %10 = tpu.matmul %8, %9, %cst_8 {dimension_numbers = #tpu.dot_dimension_numbers<[1], [0], [0], [1], [0, 0, 1, 1], [], []>} : vector<16x400xbf16>, vector<400x128xbf16>, vector<16x128xf32> -> vector<16x128xf32>
    %c0_9 = arith.constant 0 : index
    %c0_10 = arith.constant 0 : index
    %11 = vector.load %arg6[%c0_9, %c0_10] : memref<1x128xf32, #tpu.memory_space<vmem>>, vector<1x128xf32>
    %12 = vector.broadcast %11 : vector<1x128xf32> to vector<16x128xf32>
    %13 = arith.addf %10, %12 : vector<16x128xf32>
    %cst_11 = arith.constant 0.000000e+00 : f32
    %14 = vector.broadcast %cst_11 : f32 to vector<16x128xf32>
    %c0_12 = arith.constant 0 : index
    %c0_13 = arith.constant 0 : index
    %15 = vector.load %arg13[%c0_12, %c0_13] : memref<16x128xf32, #tpu.memory_space<vmem>>, vector<16x128xf32>
    tpu.vector_store %arg13[%c0_12, %c0_13], %14 {strides = array<i32>} : memref<16x128xf32, #tpu.memory_space<vmem>>, vector<16x128xf32>,
    %c0_14 = arith.constant 0 : index
    %c0_15 = arith.constant 0 : index
    %16 = vector.load %arg2[%c0_14, %c0_15] : memref<16x20xf32, #tpu.memory_space<vmem>>, vector<16x20xf32>
    %c0_16 = arith.constant 0 : index
    %c0_17 = arith.constant 0 : index
    %17 = vector.load %arg13[%c0_16, %c0_17] : memref<16x128xf32, #tpu.memory_space<vmem>>, vector<16x20xf32>
    tpu.vector_store %arg13[%c0_16, %c0_17], %16 {strides = array<i32>} : memref<16x128xf32, #tpu.memory_space<vmem>>, vector<16x20xf32>,
    %18 = tpu.iota {dimensions = array<i32: 1>} : vector<16x128xi32>
    %c20_i32 = arith.constant 20 : i32
    %19 = vector.broadcast %c20_i32 : i32 to vector<16x128xi32>
    %20 = arith.cmpi slt, %18, %19 : vector<16x128xi32>
    %c0_18 = arith.constant 0 : index
    %c0_19 = arith.constant 0 : index
    %21 = vector.load %arg13[%c0_18, %c0_19] : memref<16x128xf32, #tpu.memory_space<vmem>>, vector<16x128xf32>
    %cst_20 = arith.constant 0.000000e+00 : f32
    %22 = vector.broadcast %cst_20 : f32 to vector<16x128xf32>
    %23 = arith.select %20, %13, %22 : vector<16x128xi1>, vector<16x128xf32>
    %24 = math.exp %23 : vector<16x128xf32>
    %cst_21 = arith.constant 5.000000e-01 : f32
    %25 = vector.broadcast %cst_21 : f32 to vector<16x128xf32>
    %26 = arith.mulf %25, %24 : vector<16x128xf32>
    %27 = arith.mulf %21, %26 : vector<16x128xf32>
    %28 = arith.select %20, %27, %13 : vector<16x128xi1>, vector<16x128xf32>
    %29 = arith.truncf %28 : vector<16x128xf32> to vector<16x128xbf16>
    %c0_22 = arith.constant 0 : index
    %c0_23 = arith.constant 0 : index
    %30 = vector.load %arg7[%c0_22, %c0_23] : memref<128x400xbf16, #tpu.memory_space<vmem>>, vector<128x400xbf16>
    %cst_24 = arith.constant dense<0.000000e+00> : vector<16x400xf32>
    %31 = tpu.matmul %29, %30, %cst_24 {dimension_numbers = #tpu.dot_dimension_numbers<[1], [0], [0], [1], [0, 0, 1, 1], [], []>} : vector<16x128xbf16>, vector<128x400xbf16>, vector<16x400xf32> -> vector<16x400xf32>
    %c0_25 = arith.constant 0 : index
    %c0_26 = arith.constant 0 : index
    %32 = vector.load %arg8[%c0_25, %c0_26] : memref<1x400xf32, #tpu.memory_space<vmem>>, vector<1x400xf32>
    %33 = vector.broadcast %32 : vector<1x400xf32> to vector<16x400xf32>
    %34 = arith.addf %31, %33 : vector<16x400xf32>
    %cst_27 = arith.constant 0.000000e+00 : f32
    %35 = vector.broadcast %cst_27 : f32 to vector<16x400xf32>
    %36 = arith.maximumf %34, %35 : vector<16x400xf32>
    %37 = arith.truncf %36 : vector<16x400xf32> to vector<16x400xbf16>
    %c0_28 = arith.constant 0 : index
    %c0_29 = arith.constant 0 : index
    %38 = vector.load %arg9[%c0_28, %c0_29] : memref<400x784xbf16, #tpu.memory_space<vmem>>, vector<400x784xbf16>
    %cst_30 = arith.constant dense<0.000000e+00> : vector<16x784xf32>
    %39 = tpu.matmul %37, %38, %cst_30 {dimension_numbers = #tpu.dot_dimension_numbers<[1], [0], [0], [1], [0, 0, 1, 1], [], []>} : vector<16x400xbf16>, vector<400x784xbf16>, vector<16x784xf32> -> vector<16x784xf32>
    %c0_31 = arith.constant 0 : index
    %c0_32 = arith.constant 0 : index
    %40 = vector.load %arg10[%c0_31, %c0_32] : memref<1x784xf32, #tpu.memory_space<vmem>>, vector<1x784xf32>
    %41 = vector.broadcast %40 : vector<1x784xf32> to vector<16x784xf32>
    %42 = arith.addf %39, %41 : vector<16x784xf32>
    %43 = arith.negf %42 : vector<16x784xf32>
    %44 = math.exp %43 : vector<16x784xf32>
    %cst_33 = arith.constant 1.000000e+00 : f32
    %45 = vector.broadcast %cst_33 : f32 to vector<16x784xf32>
    %46 = arith.addf %45, %44 : vector<16x784xf32>
    %47 = arith.divf %45, %46 : vector<16x784xf32>
    %48 = arith.truncf %47 : vector<16x784xf32> to vector<16x784xbf16>
    %c0_34 = arith.constant 0 : index
    %c0_35 = arith.constant 0 : index
    %49 = vector.load %arg11[%c0_34, %c0_35] : memref<16x784xbf16, #tpu.memory_space<vmem>>, vector<16x784xbf16>
    tpu.vector_store %arg11[%c0_34, %c0_35], %48 {strides = array<i32>} : memref<16x784xbf16, #tpu.memory_space<vmem>>, vector<16x784xbf16>,
    %c0_36 = arith.constant 0 : index
    %c0_37 = arith.constant 0 : index
    %50 = vector.load %arg12[%c0_36, %c0_37] : memref<16x128xf32, #tpu.memory_space<vmem>>, vector<16x128xf32>
    tpu.vector_store %arg12[%c0_36, %c0_37], %13 {strides = array<i32>} : memref<16x128xf32, #tpu.memory_space<vmem>>, vector<16x128xf32>,
    return
  }
  func.func @transform_0(%arg0: i32) -> (i32, i32) {
    %c0_i32 = arith.constant 0 : i32
    %c0_i32_0 = arith.constant 0 : i32
    return %arg0, %c0_i32 : i32, i32
  }
  func.func @transform_1(%arg0: i32) -> (i32, i32) {
    %c0_i32 = arith.constant 0 : i32
    %c0_i32_0 = arith.constant 0 : i32
    return %arg0, %c0_i32 : i32, i32
  }
  func.func @transform_2(%arg0: i32) -> (i32, i32) {
    %c0_i32 = arith.constant 0 : i32
    %c0_i32_0 = arith.constant 0 : i32
    %c0_i32_1 = arith.constant 0 : i32
    return %c0_i32, %c0_i32_0 : i32, i32
  }
  func.func @transform_3(%arg0: i32) -> (i32, i32) {
    %c0_i32 = arith.constant 0 : i32
    %c0_i32_0 = arith.constant 0 : i32
    %c0_i32_1 = arith.constant 0 : i32
    return %c0_i32, %c0_i32_0 : i32, i32
  }
  func.func @transform_4(%arg0: i32) -> (i32, i32) {
    %c0_i32 = arith.constant 0 : i32
    %c0_i32_0 = arith.constant 0 : i32
    %c0_i32_1 = arith.constant 0 : i32
    return %c0_i32, %c0_i32_0 : i32, i32
  }
  func.func @transform_5(%arg0: i32) -> (i32, i32) {
    %c0_i32 = arith.constant 0 : i32
    %c0_i32_0 = arith.constant 0 : i32
    %c0_i32_1 = arith.constant 0 : i32
    return %c0_i32, %c0_i32_0 : i32, i32
  }
  func.func @transform_6(%arg0: i32) -> (i32, i32) {
    %c0_i32 = arith.constant 0 : i32
    %c0_i32_0 = arith.constant 0 : i32
    %c0_i32_1 = arith.constant 0 : i32
    return %c0_i32, %c0_i32_0 : i32, i32
  }
  func.func @transform_7(%arg0: i32) -> (i32, i32) {
    %c0_i32 = arith.constant 0 : i32
    %c0_i32_0 = arith.constant 0 : i32
    %c0_i32_1 = arith.constant 0 : i32
    return %c0_i32, %c0_i32_0 : i32, i32
  }
  func.func @transform_8(%arg0: i32) -> (i32, i32) {
    %c0_i32 = arith.constant 0 : i32
    %c0_i32_0 = arith.constant 0 : i32
    %c0_i32_1 = arith.constant 0 : i32
    return %c0_i32, %c0_i32_0 : i32, i32
  }
  func.func @transform_9(%arg0: i32) -> (i32, i32) {
    %c0_i32 = arith.constant 0 : i32
    %c0_i32_0 = arith.constant 0 : i32
    %c0_i32_1 = arith.constant 0 : i32
    return %c0_i32, %c0_i32_0 : i32, i32
  }
  func.func @transform_10(%arg0: i32) -> (i32, i32) {
    %c0_i32 = arith.constant 0 : i32
    %c0_i32_0 = arith.constant 0 : i32
    return %arg0, %c0_i32 : i32, i32
  }
  func.func @transform_11(%arg0: i32) -> (i32, i32) {
    %c0_i32 = arith.constant 0 : i32
    %c0_i32_0 = arith.constant 0 : i32
    return %arg0, %c0_i32 : i32, i32
  }
}

</mosaic_0001>

<bundles_post_ra>
// kernel: vae_forward.1
= control target key start
LH: loop header
LB: loop body
LE: loop exit
PB: predicated region body
PF: predicated region fallthrough
CT: control target
= control target key end

     0   :  { %s7348_s0 = inlined_call_operand.vmem [shape: bf16[32,784], index: 0, kind: input, shape index: {}]   ;;  %s7349_s1 = inlined_call_operand.vmem [shape: f32[32,20], index: 1, kind: input, shape index: {}]   ;;  %s7350_s2 = inlined_call_operand.vmem [shape: bf16[784,400], index: 2, kind: input, shape index: {}]   ;;  %s7351_s3 = inlined_call_operand.vmem [shape: f32[1,400], index: 3, kind: input, shape index: {}]   ;;  %s7352_s4 = inlined_call_operand.vmem [shape: bf16[400,128], index: 4, kind: input, shape index: {}]   ;;  %s7353_s5 = inlined_call_operand.vmem [shape: f32[1,128], index: 5, kind: input, shape index: {}]   ;;  %s7354_s6 = inlined_call_operand.vmem [shape: bf16[128,400], index: 6, kind: input, shape index: {}]   ;;  %s7355_s7 = inlined_call_operand.vmem [shape: f32[1,400], index: 7, kind: input, shape index: {}]   ;;  %s7356_s8 = inlined_call_operand.vmem [shape: bf16[400,784], index: 8, kind: input, shape index: {}]   ;;  %s7357_s9 = inlined_call_operand.vmem [shape: f32[1,784], index: 9, kind: input, shape index: {}]   ;;  %s7358_s10 = inlined_call_operand.hbm [shape: bf16[32,784], index: 10, kind: output, shape index: {0}]   ;;  %s7359_s11 = inlined_call_operand.vmem [shape: f32[32,128], index: 11, kind: output, shape index: {1}]  }
   0x1   :  { %7363 = sst [smem:[#allocation9_spill]] %s7348_s0 }
   0x2   :  { %17 = vsyncpa [#allocation4], 0 }
   0x3   :  { %19 = vsyncpa [#allocation4 + $0x1], 0  ;;  %s5794_s17 = smov 0   ;;  %s5796_s18 = smov 0  }
   0x4   :  { %s5798_s19 = smov 0   ;;  %s5800_s20 = smov 0  }
   0x5 LB: > { %7364 = sst [smem:[#allocation6_spill]] %s5723_s19  ;;  %s5815_s21 = sadd.s32 4294967295, %s5727_s20   ;;  %s5727_s20 = sphi %s5800_s20, %s7370_s20   ;;  %s5723_s19 = sphi %s5798_s19, %s7372_s19   ;;  %s5719_s18 = sphi %s5796_s18, %s7374_s18   ;;  %s5715_s17 = sphi %s5794_s17, %s7373_s17  }
   0x6   : > { %s4400_s22 = sadd.s32 4294967294, %s5727_s20   ;;  %s5819_s23 = sadd.s32 1, %s5727_s20  }
   0x7   : > { %7365 = sst [smem:[#allocation7_spill]] %s5819_s23  ;;  %s252_s24 = sadd.s32 1, %s5723_s19 }
   0x8   : > { %s249_s25 = ssub.s32 %s5727_s20, %s5819_s23  ;;  %p262_p0 = scmp.ne.s32.totalorder %s5723_s19, %s5719_s18 }
   0x9   : > { %p250_p1 = scmp.eq.s32.totalorder %s249_s25, 0  ;;  %p263_p2 = scmp.eq.s32.totalorder %s5815_s21, 1 }
   0xa   : > { %p268_p3 = scmp.ne.s32.totalorder %s5719_s18, %s5715_s17  ;;  %p269_p4 = scmp.eq.s32.totalorder %s4400_s22, 1 }
   0xb   : > { %s5830_s26 = scalar_select %p250_p1, %s5723_s19, %s252_s24  }
   0xc   : > { %p5832_p5 = por %p263_p2, %p262_p0  ;;  %p5836_p6 = por %p269_p4, %p268_p3 }
   0xd   : > { %7366 = sst [smem:[#allocation8_spill]] %s5830_s26  ;;  %p4403_p7 = scmp.ge.s32.totalorder %s5727_s20, 1 }
   0xe   : > { %p356_p8 = scmp.lt.s32.totalorder %s5727_s20, 3 }
  0x10   : > { %p357_p9 = pnand %p4403_p7, %p356_p8 }
  0x11   : > { %s4404_s29 = sshll.u32 (!%p357_p9), %s5815_s21, 1  ;;  %s7369_s0 = sld [smem:[#allocation9_spill]] (!%p357_p9) }
  0x12   : > { %360 = sbr.rel (%p357_p9) target bundleno = 1253 (0x4e5), region = 60  ;;  %p408_p10 = scmp.lt.s32.totalorder (!%p357_p9), %s4404_s29, 3 }
  0x13   : > { %s4934_s19 = smul.u32 (!%p357_p9), 896, %s5815_s21  ;;  %s5731_s30 = smov (!%p357_p9), [#allocation3]  }
  0x14   : > { %s5671_s12 = sshll.u32 (!%p357_p9), %s5731_s30, 4  ;;  %s5672_s12 = int_to_ptr.vmem [resolvable:$false] %s5671_s12 }
  0x15   : > { %s7301_s25 = scalar_lea.hbm (!%p357_p9), %s7358_s10, %s4934_s19  ;;  %s5673_s14 = scalar_lea.vmem (!%p357_p9), %s5672_s12, 1792 }
  0x17   : > { %v4978_v0 = vld [vmem:[%s7350_s2 + $0xe4] ss:$16 sps:$4 sm:$0xff]   ;;  %v4982_v2 = vld [vmem:[%s7350_s2 + $0xe0] ss:$16 sps:$4 sm:$0xff]   ;;  %s7376_s29 = smov (!%p408_p10, %s4404_s29), 3  ;;  %vm1669_vm0 = vcmask 130048  }
  0x18   : > { %v4980_v1 = vld [vmem:[%s7350_s2 + $0x2e4] ss:$16 sps:$4 sm:$0xff]   ;;  %1673 = vmatprep.subr.bf16.mxu0 %v4978_v0  ;;  %v4983_v3 = vld [vmem:[%s7350_s2 + $0x2e0] ss:$16 sps:$4 sm:$0xff]   ;;  %s4933_s13 = smul.u32 28, %s7376_s29  ;;  %s4407_s24 = sshll.u32 %s7376_s29, 3 }
  0x19   : > { %1716 = vmatprep.subr.bf16.mxu1 %v4980_v1  ;;  %v4984_v4 = vld [vmem:[%s7350_s2 + $0xc4] ss:$16 sps:$4 sm:$0xff]   ;;  %1674 = vmatpush1.bf16.msra.mxu0 %v4982_v2  ;;  %v4988_v6 = vld [vmem:[%s7350_s2 + $0xc0] ss:$16 sps:$4 sm:$0xff]   ;;  %vm2325_vm1 = vcmask 162816   ;;  %s425_s15 = scalar_lea.vmem %s7359_s11, %s4407_s24  ;;  %s397_s29 = sand.u32 1, %s5719_s18  }
  0x1a   : > { %1717 = vmatpush1.bf16.msra.mxu1 %v4983_v3  ;;  %v4986_v5 = vld [vmem:[%s7350_s2 + $0x2c4] ss:$16 sps:$4 sm:$0xff]   ;;  %1675 = vmatprep.subr.bf16.mxu0 %v4984_v4  ;;  %v4989_v7 = vld [vmem:[%s7350_s2 + $0x2c0] ss:$16 sps:$4 sm:$0xff]   ;;  %s5984_s23 = scalar_lea.vmem %s7369_s0, %s4933_s13  ;;  %s418_s13 = scalar_lea.vmem %s7349_s1, %s4407_s24  ;;  %vm4269_vm3 = vcmask 125952  }
  0x1b   : > { %1718 = vmatprep.subr.bf16.mxu1 %v4986_v5  ;;  %v4990_v8 = vld [vmem:[%s7350_s2 + $0xa4] ss:$16 sps:$4 sm:$0xff]   ;;  %v4994_v10 = vld [vmem:[%s7350_s2 + $0xa0] ss:$16 sps:$4 sm:$0xff]   ;;  %v6005_v51 = vld [vmem:[%s5984_s23 + $0xc] ss:$28 sps:$4 sm:$0xff]  }
  0x1c   : > { %v4992_v9 = vld [vmem:[%s7350_s2 + $0x2a4] ss:$16 sps:$4 sm:$0xff]   ;;  %v4995_v11 = vld [vmem:[%s7350_s2 + $0x2a0] ss:$16 sps:$4 sm:$0xff]   ;;  %1748 = vmatprep.mubr.bf16.mxu1 %v6005_v51  ;;  %s4932_s24 = smul.u32 56, %s397_s29 }
  0x1d   : > { %1676 = vmatpush1.bf16.msra.mxu0 %v4988_v6  ;;  %v4996_v12 = vld [vmem:[%s7350_s2 + $0x84] ss:$16 sps:$4 sm:$0xff]   ;;  %v5000_v14 = vld [vmem:[%s7350_s2 + $0x80] ss:$16 sps:$4 sm:$0xff]  }
  0x1e   : > { %1719 = vmatpush1.bf16.msra.mxu1 %v4989_v7  ;;  %1677 = vmatprep.subr.bf16.mxu0 %v4990_v8  ;;  %v4998_v13 = vld [vmem:[%s7350_s2 + $0x284] ss:$16 sps:$4 sm:$0xff]   ;;  %v5001_v15 = vld [vmem:[%s7350_s2 + $0x280] ss:$16 sps:$4 sm:$0xff]  }
  0x1f   : > { %1720 = vmatprep.subr.bf16.mxu1 %v4992_v9  ;;  %v5002_v16 = vld [vmem:[%s7350_s2 + $0x64] ss:$16 sps:$4 sm:$0xff]   ;;  %v5006_v18 = vld [vmem:[%s7350_s2 + $0x60] ss:$16 sps:$4 sm:$0xff]   ;;  %v5091_v9 = vld [vmem:[%s7350_s2 + $0xec] ss:$16 sps:$4 sm:$0xff]  }
  0x20   : > { %v5004_v17 = vld [vmem:[%s7350_s2 + $0x264] ss:$16 sps:$4 sm:$0xff]   ;;  %v5007_v19 = vld [vmem:[%s7350_s2 + $0x260] ss:$16 sps:$4 sm:$0xff]  }
  0x21   : > { %1678 = vmatpush1.bf16.msra.mxu0 %v4994_v10  ;;  %v5008_v20 = vld [vmem:[%s7350_s2 + $0x44] ss:$16 sps:$4 sm:$0xff]   ;;  %v5012_v22 = vld [vmem:[%s7350_s2 + $0x40] ss:$16 sps:$4 sm:$0xff]  }
  0x22   : > { %1721 = vmatpush1.bf16.msra.mxu1 %v4995_v11  ;;  %1679 = vmatprep.subr.bf16.mxu0 %v4996_v12  ;;  %v5010_v21 = vld [vmem:[%s7350_s2 + $0x244] ss:$16 sps:$4 sm:$0xff]   ;;  %v5013_v23 = vld [vmem:[%s7350_s2 + $0x240] ss:$16 sps:$4 sm:$0xff]   ;;  %v5729_v11 = vmov 0  }
  0x23   : > { %1722 = vmatprep.subr.bf16.mxu1 %v4998_v13  ;;  %v5014_v24 = vld [vmem:[%s7350_s2 + $0x24] ss:$16 sps:$4 sm:$0xff]   ;;  %v5018_v26 = vld [vmem:[%s7350_s2 + $0x20] ss:$16 sps:$4 sm:$0xff]   ;;  %v5089_v13 = vld [vmem:[%s7350_s2 + $0xe8] ss:$16 sps:$4 sm:$0xff]  }
  0x24   : > { %v5016_v25 = vld [vmem:[%s7350_s2 + $0x224] ss:$16 sps:$4 sm:$0xff]   ;;  %v5019_v27 = vld [vmem:[%s7350_s2 + $0x220] ss:$16 sps:$4 sm:$0xff]  }
  0x25   : > { %1680 = vmatpush1.bf16.msra.mxu0 %v5000_v14  ;;  %v5020_v28 = vld [vmem:[%s7350_s2 + $0x4] ss:$16 sps:$4 sm:$0xff]   ;;  %v5024_v30 = vld [vmem:[%s7350_s2] ss:$16 sps:$4 sm:$0xff]  }
  0x26   : > { %1723 = vmatpush1.bf16.msra.mxu1 %v5001_v15  ;;  %1681 = vmatprep.subr.bf16.mxu0 %v5002_v16  ;;  %v5022_v29 = vld [vmem:[%s7350_s2 + $0x204] ss:$16 sps:$4 sm:$0xff]   ;;  %v5025_v31 = vld [vmem:[%s7350_s2 + $0x200] ss:$16 sps:$4 sm:$0xff]   ;;  %v5098_v16 = vld [vmem:[%s7350_s2 + $0xcc] ss:$16 sps:$4 sm:$0xff]  }
  0x27   : > { %1724 = vmatprep.subr.bf16.mxu1 %v5004_v17  ;;  %v5026_v32 = vld [vmem:[%s7350_s2 + $0x1e4] ss:$16 sps:$4 sm:$0xff]   ;;  %v5030_v34 = vld [vmem:[%s7350_s2 + $0x1e0] ss:$16 sps:$4 sm:$0xff]  }
  0x28   : > { %v5028_v33 = vld [vmem:[%s7350_s2 + $0x3e4] ss:$16 sps:$4 sm:$0xff]   ;;  %v5031_v35 = vld [vmem:[%s7350_s2 + $0x3e0] ss:$16 sps:$4 sm:$0xff]  }
  0x29   : > { %1682 = vmatpush1.bf16.msra.mxu0 %v5006_v18  ;;  %v5032_v36 = vld [vmem:[%s7350_s2 + $0x1c4] ss:$16 sps:$4 sm:$0xff]   ;;  %v5036_v38 = vld [vmem:[%s7350_s2 + $0x1c0] ss:$16 sps:$4 sm:$0xff]   ;;  %v5096_v18 = vld [vmem:[%s7350_s2 + $0xc8] ss:$16 sps:$4 sm:$0xff]  }
  0x2a   : > { %1725 = vmatpush1.bf16.msra.mxu1 %v5007_v19  ;;  %1683 = vmatprep.subr.bf16.mxu0 %v5008_v20  ;;  %v5034_v37 = vld [vmem:[%s7350_s2 + $0x3c4] ss:$16 sps:$4 sm:$0xff]   ;;  %v5037_v39 = vld [vmem:[%s7350_s2 + $0x3c0] ss:$16 sps:$4 sm:$0xff]   ;;  %v5104_v20 = vld [vmem:[%s7350_s2 + $0xac] ss:$16 sps:$4 sm:$0xff]  }
  0x2b   : > { %1726 = vmatprep.subr.bf16.mxu1 %v5010_v21  ;;  %v5038_v40 = vld [vmem:[%s7350_s2 + $0x1a4] ss:$16 sps:$4 sm:$0xff]   ;;  %v5042_v42 = vld [vmem:[%s7350_s2 + $0x1a0] ss:$16 sps:$4 sm:$0xff]  }
  0x2c   : > { %v5040_v41 = vld [vmem:[%s7350_s2 + $0x3a4] ss:$16 sps:$4 sm:$0xff]   ;;  %v5043_v43 = vld [vmem:[%s7350_s2 + $0x3a0] ss:$16 sps:$4 sm:$0xff]  }
  0x2d   : > { %1684 = vmatpush1.bf16.msra.mxu0 %v5012_v22  ;;  %v5044_v44 = vld [vmem:[%s7350_s2 + $0x184] ss:$16 sps:$4 sm:$0xff]   ;;  %v5048_v46 = vld [vmem:[%s7350_s2 + $0x180] ss:$16 sps:$4 sm:$0xff]   ;;  %v5102_v22 = vld [vmem:[%s7350_s2 + $0xa8] ss:$16 sps:$4 sm:$0xff]  }
  0x2e   : > { %1727 = vmatpush1.bf16.msra.mxu1 %v5013_v23  ;;  %1685 = vmatprep.subr.bf16.mxu0 %v5014_v24  ;;  %v5046_v45 = vld [vmem:[%s7350_s2 + $0x384] ss:$16 sps:$4 sm:$0xff]   ;;  %v5049_v47 = vld [vmem:[%s7350_s2 + $0x380] ss:$16 sps:$4 sm:$0xff]   ;;  %v5110_v24 = vld [vmem:[%s7350_s2 + $0x8c] ss:$16 sps:$4 sm:$0xff]  }
  0x2f   : > { %1728 = vmatprep.subr.bf16.mxu1 %v5016_v25  ;;  %v5050_v48 = vld [vmem:[%s7350_s2 + $0x164] ss:$16 sps:$4 sm:$0xff]   ;;  %v5054_v52 = vld [vmem:[%s7350_s2 + $0x160] ss:$16 sps:$4 sm:$0xff]  }
  0x30   : > { %v5999_v49 = vld [vmem:[%s5984_s23 + $0x4] ss:$28 sps:$4 sm:$0xff]   ;;  %v5095_v14 = vld [vmem:[%s5984_s23 + $0x18] ss:$28 sps:$4 sm:$0xff]  }
  0x31   : > { %1686 = vmatpush1.bf16.msra.mxu0 %v5018_v26  ;;  %v5052_v50 = vld [vmem:[%s7350_s2 + $0x364] ss:$16 sps:$4 sm:$0xff]   ;;  %1705 = vmatprep.mubr.bf16.mxu0 %v5999_v49  ;;  %v5055_v53 = vld [vmem:[%s7350_s2 + $0x360] ss:$16 sps:$4 sm:$0xff]   ;;  %v5108_v26 = vld [vmem:[%s7350_s2 + $0x88] ss:$16 sps:$4 sm:$0xff]  }
  0x32   : > { %1729 = vmatpush1.bf16.msra.mxu1 %v5019_v27  ;;  %1687 = vmatprep.subr.bf16.mxu0 %v5020_v28  ;;  %v5056_v54 = vld [vmem:[%s7350_s2 + $0x144] ss:$16 sps:$4 sm:$0xff]   ;;  %v5060_v56 = vld [vmem:[%s7350_s2 + $0x140] ss:$16 sps:$4 sm:$0xff]   ;;  %v5116_v28 = vld [vmem:[%s7350_s2 + $0x6c] ss:$16 sps:$4 sm:$0xff]  }
  0x33   : > { %1730 = vmatprep.subr.bf16.mxu1 %v5022_v29  ;;  %v5058_v55 = vld [vmem:[%s7350_s2 + $0x344] ss:$16 sps:$4 sm:$0xff]   ;;  %v5061_v57 = vld [vmem:[%s7350_s2 + $0x340] ss:$16 sps:$4 sm:$0xff]  }
  0x34   : > { %v5062_v58 = vld [vmem:[%s7350_s2 + $0x124] ss:$16 sps:$4 sm:$0xff]   ;;  %v5066_v60 = vld [vmem:[%s7350_s2 + $0x120] ss:$16 sps:$4 sm:$0xff]  }
  0x35   : > { %1688 = vmatpush1.bf16.msra.mxu0 %v5024_v30  ;;  %v5064_v59 = vld [vmem:[%s7350_s2 + $0x324] ss:$16 sps:$4 sm:$0xff]   ;;  %v5067_v61 = vld [vmem:[%s7350_s2 + $0x320] ss:$16 sps:$4 sm:$0xff]   ;;  %v5114_v30 = vld [vmem:[%s7350_s2 + $0x68] ss:$16 sps:$4 sm:$0xff]  }
  0x36   : > { %1731 = vmatpush1.bf16.msra.mxu1 %v5025_v31  ;;  %1689 = vmatprep.subr.bf16.mxu0 %v5026_v32  ;;  %v5068_v62 = vld [vmem:[%s7350_s2 + $0x104] ss:$16 sps:$4 sm:$0xff]   ;;  %v5072_v0 = vld [vmem:[%s7350_s2 + $0x100] ss:$16 sps:$4 sm:$0xff]   ;;  %v5122_v32 = vld [vmem:[%s7350_s2 + $0x4c] ss:$16 sps:$4 sm:$0xff]  }
  0x37   : > { %1732 = vmatprep.subr.bf16.mxu1 %v5028_v33  ;;  %v5070_v63 = vld [vmem:[%s7350_s2 + $0x304] ss:$16 sps:$4 sm:$0xff]   ;;  %v5073_v1 = vld [vmem:[%s7350_s2 + $0x300] ss:$16 sps:$4 sm:$0xff]  }
  0x38   : > { %v5082_v2 = vld [vmem:[%s7350_s2 + $0x4e4] ss:$16 sps:$4 sm:$0xff]   ;;  %v6058_v4 = vld [vmem:[%s5984_s23] ss:$28 sps:$4 sm:$0xff]  }
  0x39   : > { %1690 = vmatpush2.bf16.msra.mxu0 %v5030_v34  ;;  %v5085_v3 = vld [vmem:[%s7350_s2 + $0x604] ss:$16 sps:$4 sm:$0xff]   ;;  %v5080_v6 = vld [vmem:[%s7350_s2 + $0x4e0] ss:$16 sps:$4 sm:$0xff]  }
  0x3a   : > { %1733 = vmatpush2.bf16.msra.mxu1 %v5031_v35  ;;  %1691 = vmatprep.subr.bf16.mxu0 %v5032_v36  ;;  %v5077_v5 = vld [vmem:[%s5984_s23 + $0x8] ss:$28 sps:$4 sm:$0xff]   ;;  %v5083_v7 = vld [vmem:[%s7350_s2 + $0x600] ss:$16 sps:$4 sm:$0xff]  }
  0x3b   : > { %1734 = vmatprep.subr.bf16.mxu1 %v5034_v37  ;;  %v5088_v8 = vld [vmem:[%s7350_s2 + $0x4c4] ss:$16 sps:$4 sm:$0xff]   ;;  %v5086_v10 = vld [vmem:[%s7350_s2 + $0x4c0] ss:$16 sps:$4 sm:$0xff]   ;;  %v5120_v35 = vld [vmem:[%s7350_s2 + $0x48] ss:$16 sps:$4 sm:$0xff]  }
  0x3c   : > { %v5094_v12 = vld [vmem:[%s7350_s2 + $0x4a4] ss:$16 sps:$4 sm:$0xff]   ;;  %v5092_v15 = vld [vmem:[%s7350_s2 + $0x4a0] ss:$16 sps:$4 sm:$0xff]   ;;  %v5128_v37 = vld [vmem:[%s7350_s2 + $0x2c] ss:$16 sps:$4 sm:$0xff]  }
  0x3d   : > { %1692 = vmatpush2.bf16.msra.mxu0 %v5036_v38  ;;  %v5101_v17 = vld [vmem:[%s7350_s2 + $0x484] ss:$16 sps:$4 sm:$0xff]   ;;  %v5099_v19 = vld [vmem:[%s7350_s2 + $0x480] ss:$16 sps:$4 sm:$0xff]  }
  0x3e   : > { %1735 = vmatpush2.bf16.msra.mxu1 %v5037_v39  ;;  %1693 = vmatprep.subr.bf16.mxu0 %v5038_v40  ;;  %v5107_v21 = vld [vmem:[%s7350_s2 + $0x464] ss:$16 sps:$4 sm:$0xff]   ;;  %v5105_v23 = vld [vmem:[%s7350_s2 + $0x460] ss:$16 sps:$4 sm:$0xff]   ;;  %v5126_v39 = vld [vmem:[%s7350_s2 + $0x28] ss:$16 sps:$4 sm:$0xff]  }
  0x3f   : > { %1736 = vmatprep.subr.bf16.mxu1 %v5040_v41  ;;  %v5113_v25 = vld [vmem:[%s7350_s2 + $0x444] ss:$16 sps:$4 sm:$0xff]   ;;  %v5111_v27 = vld [vmem:[%s7350_s2 + $0x440] ss:$16 sps:$4 sm:$0xff]   ;;  %v5134_v41 = vld [vmem:[%s7350_s2 + $0xc] ss:$16 sps:$4 sm:$0xff]  }
  0x40   : > { %v5119_v29 = vld [vmem:[%s7350_s2 + $0x424] ss:$16 sps:$4 sm:$0xff]   ;;  %v5117_v31 = vld [vmem:[%s7350_s2 + $0x420] ss:$16 sps:$4 sm:$0xff]  }
  0x41   : > { %1694 = vmatpush2.bf16.msra.mxu0 %v5042_v42  ;;  %v6142_v33 = vld [vmem:[%s5984_s23 + $0x14] ss:$28 sps:$4 sm:$0xff]  }
  0x42   : > { %1737 = vmatpush2.bf16.msra.mxu1 %v5043_v43  ;;  %1695 = vmatprep.subr.bf16.mxu0 %v5044_v44  ;;  %v5125_v34 = vld [vmem:[%s7350_s2 + $0x404] ss:$16 sps:$4 sm:$0xff]   ;;  %v5123_v36 = vld [vmem:[%s7350_s2 + $0x400] ss:$16 sps:$4 sm:$0xff]   ;;  %v5132_v43 = vld [vmem:[%s7350_s2 + $0x8] ss:$16 sps:$4 sm:$0xff]  }
  0x43   : > { %1738 = vmatprep.subr.bf16.mxu1 %v5046_v45  ;;  %v5131_v38 = vld [vmem:[%s7350_s2 + $0x5e4] ss:$16 sps:$4 sm:$0xff]   ;;  %v5129_v40 = vld [vmem:[%s7350_s2 + $0x5e0] ss:$16 sps:$4 sm:$0xff]   ;;  %v5140_v45 = vld [vmem:[%s7350_s2 + $0x1ec] ss:$16 sps:$4 sm:$0xff]  }
  0x44   : > { %v5137_v42 = vld [vmem:[%s7350_s2 + $0x5c4] ss:$16 sps:$4 sm:$0xff]   ;;  %v5135_v44 = vld [vmem:[%s7350_s2 + $0x5c0] ss:$16 sps:$4 sm:$0xff]  }
  0x45   : > { %1696 = vmatpush2.bf16.msra.mxu0 %v5048_v46  ;;  %v5143_v46 = vld [vmem:[%s7350_s2 + $0x5a4] ss:$16 sps:$4 sm:$0xff]  }
  0x46   : > { %1739 = vmatpush2.bf16.msra.mxu1 %v5049_v47  ;;  %1697 = vmatprep.subr.bf16.mxu0 %v5050_v48  ;;  %v5138_v47 = vld [vmem:[%s7350_s2 + $0x1e8] ss:$16 sps:$4 sm:$0xff]   ;;  %v5141_v48 = vld [vmem:[%s7350_s2 + $0x5a0] ss:$16 sps:$4 sm:$0xff]  }
  0x47   : > { %1740 = vmatprep.subr.bf16.mxu1 %v5052_v50  ;;  %v5149_v50 = vld [vmem:[%s7350_s2 + $0x584] ss:$16 sps:$4 sm:$0xff]  }
  0x49   : > { %1698 = vmatpush2.bf16.msra.mxu0 %v5054_v52  ;;  %v5144_v52 = vld [vmem:[%s7350_s2 + $0x1c8] ss:$16 sps:$4 sm:$0xff]  }
  0x4a   : > { %1741 = vmatpush2.bf16.msra.mxu1 %v5055_v53  ;;  %1699 = vmatprep.subr.bf16.mxu0 %v5056_v54  ;;  %v5147_v53 = vld [vmem:[%s7350_s2 + $0x580] ss:$16 sps:$4 sm:$0xff]   ;;  %v5152_v54 = vld [vmem:[%s7350_s2 + $0x1ac] ss:$16 sps:$4 sm:$0xff]  }
  0x4b   : > { %1742 = vmatprep.subr.bf16.mxu1 %v5058_v55  ;;  %v5155_v55 = vld [vmem:[%s7350_s2 + $0x564] ss:$16 sps:$4 sm:$0xff]  }
  0x4d   : > { %1700 = vmatpush2.bf16.msra.mxu0 %v5060_v56  ;;  %v5150_v56 = vld [vmem:[%s7350_s2 + $0x1a8] ss:$16 sps:$4 sm:$0xff]  }
  0x4e   : > { %1743 = vmatpush2.bf16.msra.mxu1 %v5061_v57  ;;  %1701 = vmatprep.subr.bf16.mxu0 %v5062_v58  ;;  %v5153_v57 = vld [vmem:[%s7350_s2 + $0x560] ss:$16 sps:$4 sm:$0xff]   ;;  %v5158_v58 = vld [vmem:[%s7350_s2 + $0x18c] ss:$16 sps:$4 sm:$0xff]  }
  0x4f   : > { %1744 = vmatprep.subr.bf16.mxu1 %v5064_v59  ;;  %v5161_v59 = vld [vmem:[%s7350_s2 + $0x544] ss:$16 sps:$4 sm:$0xff]  }
  0x51   : > { %1702 = vmatpush2.bf16.msra.mxu0 %v5066_v60  ;;  %v5156_v60 = vld [vmem:[%s7350_s2 + $0x188] ss:$16 sps:$4 sm:$0xff]  }
  0x52   : > { %1745 = vmatpush2.bf16.msra.mxu1 %v5067_v61  ;;  %1703 = vmatprep.subr.bf16.mxu0 %v5068_v62  ;;  %v5159_v61 = vld [vmem:[%s7350_s2 + $0x540] ss:$16 sps:$4 sm:$0xff]   ;;  %v5164_v62 = vld [vmem:[%s7350_s2 + $0x16c] ss:$16 sps:$4 sm:$0xff]  }
  0x53   : > { %1746 = vmatprep.subr.bf16.mxu1 %v5070_v63  ;;  %v5167_v63 = vld [vmem:[%s7350_s2 + $0x524] ss:$16 sps:$4 sm:$0xff]  }
  0x55   : > { %1704 = vmatpush2.bf16.msra.mxu0 %v5072_v0  ;;  %v5162_v0 = vld [vmem:[%s7350_s2 + $0x168] ss:$16 sps:$4 sm:$0xff]  }
  0x56   : > { %1747 = vmatpush2.bf16.msra.mxu1 %v5073_v1  ;;  %1759 = vmatprep.subr.bf16.mxu0 %v5082_v2  ;;  %v5165_v1 = vld [vmem:[%s7350_s2 + $0x520] ss:$16 sps:$4 sm:$0xff]   ;;  %v5170_v2 = vld [vmem:[%s7350_s2 + $0x14c] ss:$16 sps:$4 sm:$0xff]  }
  0x57   : > { %1816 = vmatprep.subr.bf16.mxu1 %v5085_v3  ;;  %v5173_v3 = vld [vmem:[%s7350_s2 + $0x504] ss:$16 sps:$4 sm:$0xff]  }
  0x58   : > { %1706 = vmatmul.mubr.bf16.vlgmr.msra.gmra.mxu0 %v6058_v4 }
  0x59   : > { %1749 = vmatmul.mubr.bf16.vlgmr.msra.gmra.mxu1 %v5077_v5  ;;  %1760 = vmatpush1.bf16.msra.mxu0 %v5080_v6  ;;  %v5168_v5 = vld [vmem:[%s7350_s2 + $0x148] ss:$16 sps:$4 sm:$0xff]   ;;  %v5171_v6 = vld [vmem:[%s7350_s2 + $0x500] ss:$16 sps:$4 sm:$0xff]  }
  0x5a   : > { %1817 = vmatpush1.bf16.msra.mxu1 %v5083_v7  ;;  %1761 = vmatprep.subr.bf16.mxu0 %v5088_v8  ;;  %v5179_v7 = vld [vmem:[%s7350_s2 + $0x12c] ss:$16 sps:$4 sm:$0xff]  }
  0x5b   : > { %1834 = vmatprep.mubr.bf16.mxu1 %v5729_v11  ;;  %1845 = vmatprep.subr.bf16.mxu1 %v5091_v9  ;;  %v5182_v8 = vld [vmem:[%s7350_s2 + $0x2ec] ss:$16 sps:$4 sm:$0xff]  }
  0x5c   : > { %1791 = vmatprep.mubr.bf16.mxu0 %v6142_v33  ;;  %v6257_v9 = vld [vmem:[%s5984_s23 + $0x10] ss:$28 sps:$4 sm:$0xff]  }
  0x5d   : > { %1762 = vmatpush1.bf16.msra.mxu0 %v5086_v10  ;;  %v5177_v10 = vld [vmem:[%s7350_s2 + $0x128] ss:$16 sps:$4 sm:$0xff]  }
  0x5e   : > { %1763 = vmatprep.subr.bf16.mxu0 %v5094_v12  ;;  %v5180_v12 = vld [vmem:[%s7350_s2 + $0x2e8] ss:$16 sps:$4 sm:$0xff]  }
  0x61   : > { %4613 = vmatmul.mubr.msk.bf16.vlgmr.msra.gmra.mxu1 %vm1669_vm0, %v5095_v14  ;;  %1764 = vmatpush1.bf16.msra.mxu0 %v5092_v15  ;;  %v5188_v14 = vld [vmem:[%s7350_s2 + $0x2cc] ss:$16 sps:$4 sm:$0xff]   ;;  %v5183_v15 = vld [vmem:[%s7350_s2 + $0x108] ss:$16 sps:$4 sm:$0xff]  }
  0x62   : > { %1846 = vmatpush1.bf16.msra.mxu1 %v5089_v13  ;;  %1765 = vmatprep.subr.bf16.mxu0 %v5101_v17  ;;  %v5185_v13 = vld [vmem:[%s7350_s2 + $0x10c] ss:$16 sps:$4 sm:$0xff]  }
  0x63   : > { %1847 = vmatprep.subr.bf16.mxu1 %v5098_v16  ;;  %1877 = vmatprep.mubr.bf16.mxu1 %v5999_v49  ;;  %v5146_v49 = vld [vmem:[%s7350_s2 + $0x1cc] ss:$16 sps:$4 sm:$0xff]   ;;  %v5186_v16 = vld [vmem:[%s7350_s2 + $0x2c8] ss:$16 sps:$4 sm:$0xff]  }
  0x64   : > { %v5191_v17 = vld [vmem:[%s7350_s2 + $0x4ec] ss:$16 sps:$4 sm:$0xff]  }
  0x65   : > { %1766 = vmatpush1.bf16.msra.mxu0 %v5099_v19  ;;  %v5189_v19 = vld [vmem:[%s7350_s2 + $0x4e8] ss:$16 sps:$4 sm:$0xff]  }
  0x66   : > { %1848 = vmatpush1.bf16.msra.mxu1 %v5096_v18  ;;  %1767 = vmatprep.subr.bf16.mxu0 %v5107_v21  ;;  %v5194_v18 = vld [vmem:[%s7350_s2 + $0x2ac] ss:$16 sps:$4 sm:$0xff]  }
  0x67   : > { %1849 = vmatprep.subr.bf16.mxu1 %v5104_v20  ;;  %v5192_v20 = vld [vmem:[%s7350_s2 + $0x2a8] ss:$16 sps:$4 sm:$0xff]   ;;  %v5197_v21 = vld [vmem:[%s7350_s2 + $0x4cc] ss:$16 sps:$4 sm:$0xff]  }
  0x69   : > { %1768 = vmatpush1.bf16.msra.mxu0 %v5105_v23  ;;  %v5198_v23 = vld [vmem:[%s7350_s2 + $0x288] ss:$16 sps:$4 sm:$0xff]  }
  0x6a   : > { %1850 = vmatpush1.bf16.msra.mxu1 %v5102_v22  ;;  %1769 = vmatprep.subr.bf16.mxu0 %v5113_v25  ;;  %v5200_v22 = vld [vmem:[%s7350_s2 + $0x28c] ss:$16 sps:$4 sm:$0xff]  }
  0x6b   : > { %1851 = vmatprep.subr.bf16.mxu1 %v5110_v24  ;;  %v5203_v24 = vld [vmem:[%s7350_s2 + $0x4ac] ss:$16 sps:$4 sm:$0xff]  }
  0x6c   : > { %v5206_v25 = vld [vmem:[%s7350_s2 + $0x26c] ss:$16 sps:$4 sm:$0xff]  }
  0x6d   : > { %1770 = vmatpush1.bf16.msra.mxu0 %v5111_v27  ;;  %v5209_v27 = vld [vmem:[%s7350_s2 + $0x48c] ss:$16 sps:$4 sm:$0xff]  }
  0x6e   : > { %1852 = vmatpush1.bf16.msra.mxu1 %v5108_v26  ;;  %1771 = vmatprep.subr.bf16.mxu0 %v5119_v29  ;;  %v5201_v26 = vld [vmem:[%s7350_s2 + $0x4a8] ss:$16 sps:$4 sm:$0xff]  }
  0x6f   : > { %1853 = vmatprep.subr.bf16.mxu1 %v5116_v28  ;;  %v5212_v28 = vld [vmem:[%s7350_s2 + $0x24c] ss:$16 sps:$4 sm:$0xff]   ;;  %v5207_v29 = vld [vmem:[%s7350_s2 + $0x488] ss:$16 sps:$4 sm:$0xff]  }
  0x71   : > { %1772 = vmatpush1.bf16.msra.mxu0 %v5117_v31  ;;  %v5215_v31 = vld [vmem:[%s7350_s2 + $0x46c] ss:$16 sps:$4 sm:$0xff]  }
  0x72   : > { %1854 = vmatpush1.bf16.msra.mxu1 %v5114_v30  ;;  %1773 = vmatprep.subr.bf16.mxu0 %v5125_v34  ;;  %v5210_v30 = vld [vmem:[%s7350_s2 + $0x248] ss:$16 sps:$4 sm:$0xff]  }
  0x73   : > { %1855 = vmatprep.subr.bf16.mxu1 %v5122_v32  ;;  %v5218_v32 = vld [vmem:[%s7350_s2 + $0x22c] ss:$16 sps:$4 sm:$0xff]   ;;  %v5216_v34 = vld [vmem:[%s7350_s2 + $0x228] ss:$16 sps:$4 sm:$0xff]  }
  0x75   : > { %1774 = vmatpush1.bf16.msra.mxu0 %v5123_v36  ;;  %v5224_v36 = vld [vmem:[%s7350_s2 + $0x20c] ss:$16 sps:$4 sm:$0xff]  }
  0x76   : > { %1856 = vmatpush1.bf16.msra.mxu1 %v5120_v35  ;;  %1775 = vmatprep.subr.bf16.mxu0 %v5131_v38  ;;  %v5221_v35 = vld [vmem:[%s7350_s2 + $0x44c] ss:$16 sps:$4 sm:$0xff]   ;;  %v5222_v38 = vld [vmem:[%s7350_s2 + $0x208] ss:$16 sps:$4 sm:$0xff]  }
  0x77   : > { %1857 = vmatprep.subr.bf16.mxu1 %v5128_v37  ;;  %v5219_v37 = vld [vmem:[%s7350_s2 + $0x448] ss:$16 sps:$4 sm:$0xff]  }
  0x79   : > { %1776 = vmatpush2.bf16.msra.mxu0 %v5129_v40  ;;  %v5230_v40 = vld [vmem:[%s7350_s2 + $0x3ec] ss:$16 sps:$4 sm:$0xff]  }
  0x7a   : > { %1858 = vmatpush1.bf16.msra.mxu1 %v5126_v39  ;;  %1777 = vmatprep.subr.bf16.mxu0 %v5137_v42  ;;  %v5227_v39 = vld [vmem:[%s7350_s2 + $0x42c] ss:$16 sps:$4 sm:$0xff]   ;;  %v5228_v42 = vld [vmem:[%s7350_s2 + $0x3e8] ss:$16 sps:$4 sm:$0xff]  }
  0x7b   : > { %1859 = vmatprep.subr.bf16.mxu1 %v5134_v41  ;;  %v5225_v41 = vld [vmem:[%s7350_s2 + $0x428] ss:$16 sps:$4 sm:$0xff]  }
  0x7d   : > { %1778 = vmatpush2.bf16.msra.mxu0 %v5135_v44  ;;  %v5236_v44 = vld [vmem:[%s7350_s2 + $0x3cc] ss:$16 sps:$4 sm:$0xff]  }
  0x7e   : > { %1860 = vmatpush1.bf16.msra.mxu1 %v5132_v43  ;;  %1779 = vmatprep.subr.bf16.mxu0 %v5143_v46  ;;  %v5233_v43 = vld [vmem:[%s7350_s2 + $0x40c] ss:$16 sps:$4 sm:$0xff]   ;;  %v5234_v46 = vld [vmem:[%s7350_s2 + $0x3c8] ss:$16 sps:$4 sm:$0xff]  }
  0x7f   : > { %1861 = vmatprep.subr.bf16.mxu1 %v5140_v45  ;;  %v5231_v45 = vld [vmem:[%s7350_s2 + $0x408] ss:$16 sps:$4 sm:$0xff]  }
  0x81   : > { %1780 = vmatpush2.bf16.msra.mxu0 %v5141_v48  ;;  %v5242_v48 = vld [vmem:[%s7350_s2 + $0x3ac] ss:$16 sps:$4 sm:$0xff]  }
  0x82   : > { %1862 = vmatpush2.bf16.msra.mxu1 %v5138_v47  ;;  %1781 = vmatprep.subr.bf16.mxu0 %v5149_v50  ;;  %v5239_v47 = vld [vmem:[%s7350_s2 + $0x5ec] ss:$16 sps:$4 sm:$0xff]   ;;  %v5240_v50 = vld [vmem:[%s7350_s2 + $0x3a8] ss:$16 sps:$4 sm:$0xff]  }
  0x83   : > { %1863 = vmatprep.subr.bf16.mxu1 %v5146_v49  ;;  %v5237_v49 = vld [vmem:[%s7350_s2 + $0x5e8] ss:$16 sps:$4 sm:$0xff]  }
  0x85   : > { %1782 = vmatpush2.bf16.msra.mxu0 %v5147_v53  ;;  %v5248_v53 = vld [vmem:[%s7350_s2 + $0x38c] ss:$16 sps:$4 sm:$0xff]  }
  0x86   : > { %1864 = vmatpush2.bf16.msra.mxu1 %v5144_v52  ;;  %1783 = vmatprep.subr.bf16.mxu0 %v5155_v55  ;;  %v5245_v52 = vld [vmem:[%s7350_s2 + $0x5cc] ss:$16 sps:$4 sm:$0xff]   ;;  %v5246_v55 = vld [vmem:[%s7350_s2 + $0x388] ss:$16 sps:$4 sm:$0xff]  }
  0x87   : > { %1865 = vmatprep.subr.bf16.mxu1 %v5152_v54  ;;  %v5243_v54 = vld [vmem:[%s7350_s2 + $0x5c8] ss:$16 sps:$4 sm:$0xff]  }
  0x89   : > { %1784 = vmatpush2.bf16.msra.mxu0 %v5153_v57  ;;  %v5254_v57 = vld [vmem:[%s7350_s2 + $0x36c] ss:$16 sps:$4 sm:$0xff]  }
  0x8a   : > { %1866 = vmatpush2.bf16.msra.mxu1 %v5150_v56  ;;  %1785 = vmatprep.subr.bf16.mxu0 %v5161_v59  ;;  %v5251_v56 = vld [vmem:[%s7350_s2 + $0x5ac] ss:$16 sps:$4 sm:$0xff]   ;;  %v5252_v59 = vld [vmem:[%s7350_s2 + $0x368] ss:$16 sps:$4 sm:$0xff]  }
  0x8b   : > { %1867 = vmatprep.subr.bf16.mxu1 %v5158_v58  ;;  %v5249_v58 = vld [vmem:[%s7350_s2 + $0x5a8] ss:$16 sps:$4 sm:$0xff]  }
  0x8d   : > { %1786 = vmatpush2.bf16.msra.mxu0 %v5159_v61  ;;  %v5260_v61 = vld [vmem:[%s7350_s2 + $0x34c] ss:$16 sps:$4 sm:$0xff]  }
  0x8e   : > { %1868 = vmatpush2.bf16.msra.mxu1 %v5156_v60  ;;  %1787 = vmatprep.subr.bf16.mxu0 %v5167_v63  ;;  %v5257_v60 = vld [vmem:[%s7350_s2 + $0x58c] ss:$16 sps:$4 sm:$0xff]   ;;  %v5258_v63 = vld [vmem:[%s7350_s2 + $0x348] ss:$16 sps:$4 sm:$0xff]  }
  0x8f   : > { %1869 = vmatprep.subr.bf16.mxu1 %v5164_v62  ;;  %v5255_v62 = vld [vmem:[%s7350_s2 + $0x588] ss:$16 sps:$4 sm:$0xff]  }
  0x91   : > { %1788 = vmatpush2.bf16.msra.mxu0 %v5165_v1  ;;  %v5266_v1 = vld [vmem:[%s7350_s2 + $0x32c] ss:$16 sps:$4 sm:$0xff]  }
  0x92   : > { %1870 = vmatpush2.bf16.msra.mxu1 %v5162_v0  ;;  %1789 = vmatprep.subr.bf16.mxu0 %v5173_v3  ;;  %v5263_v0 = vld [vmem:[%s7350_s2 + $0x56c] ss:$16 sps:$4 sm:$0xff]   ;;  %v5264_v3 = vld [vmem:[%s7350_s2 + $0x328] ss:$16 sps:$4 sm:$0xff]  }
  0x93   : > { %1871 = vmatprep.subr.bf16.mxu1 %v5170_v2  ;;  %v5261_v2 = vld [vmem:[%s7350_s2 + $0x568] ss:$16 sps:$4 sm:$0xff]  }
  0x95   : > { %1790 = vmatpush2.bf16.msra.mxu0 %v5171_v6  ;;  %v5272_v6 = vld [vmem:[%s7350_s2 + $0x30c] ss:$16 sps:$4 sm:$0xff]  }
  0x96   : > { %1872 = vmatpush2.bf16.msra.mxu1 %v5168_v5  ;;  %1888 = vmatprep.subr.bf16.mxu0 %v5182_v8  ;;  %v5269_v5 = vld [vmem:[%s7350_s2 + $0x54c] ss:$16 sps:$4 sm:$0xff]   ;;  %v5270_v8 = vld [vmem:[%s7350_s2 + $0x308] ss:$16 sps:$4 sm:$0xff]  }
  0x97   : > { %1873 = vmatprep.subr.bf16.mxu1 %v5179_v7  ;;  %v5267_v7 = vld [vmem:[%s7350_s2 + $0x548] ss:$16 sps:$4 sm:$0xff]  }
  0x98   : > { %1792 = vmatmul.mubr.bf16.vlgmr.msra.gmra.mxu0 %v6257_v9 }
  0x99   : > { %1889 = vmatpush1.bf16.msra.mxu0 %v5180_v12  ;;  %1920 = vmatprep.mubr.bf16.mxu0 %v6005_v51  ;;  %v5195_v51 = vld [vmem:[%s7350_s2 + $0x4c8] ss:$16 sps:$4 sm:$0xff]  }
  0x9a   : > { %1874 = vmatpush2.bf16.msra.mxu1 %v5177_v10  ;;  %1890 = vmatprep.subr.bf16.mxu0 %v5188_v14  ;;  %v5275_v10 = vld [vmem:[%s7350_s2 + $0x52c] ss:$16 sps:$4 sm:$0xff]  }
  0x9b   : > { %1875 = vmatprep.subr.bf16.mxu1 %v5185_v13  ;;  %v5282_v12 = vld [vmem:[%s7352_s4 + $0x78] sm:$0xff]  }
  0x9c   : > { %v5273_v13 = vld [vmem:[%s7350_s2 + $0x528] ss:$16 sps:$4 sm:$0xff]  }
  0x9d   : > { %1891 = vmatpush1.bf16.msra.mxu0 %v5186_v16  ;;  %v5283_v14 = vld [vmem:[%s7352_s4 + $0x38] sm:$0xff]   ;;  %v5284_v16 = vld [vmem:[%s7352_s4 + $0x70] sm:$0xff]  }
  0x9e   : > { %1876 = vmatpush2.bf16.msra.mxu1 %v5183_v15  ;;  %1892 = vmatprep.subr.bf16.mxu0 %v5194_v18  ;;  %v5278_v15 = vld [vmem:[%s7350_s2 + $0x50c] ss:$16 sps:$4 sm:$0xff]   ;;  %v5285_v18 = vld [vmem:[%s7352_s4 + $0x30] sm:$0xff]  }
  0x9f   : > { %1931 = vmatprep.subr.bf16.mxu1 %v5191_v17  ;;  %v5276_v17 = vld [vmem:[%s7350_s2 + $0x508] ss:$16 sps:$4 sm:$0xff]  }
  0xa1   : > { %1878 = vmatmul.mubr.bf16.vlgmr.msra.gmra.mxu1 %v6058_v4  ;;  %1893 = vmatpush1.bf16.msra.mxu0 %v5192_v20  ;;  %v5204_v4 = vld [vmem:[%s7350_s2 + $0x268] ss:$16 sps:$4 sm:$0xff]   ;;  %v5281_v20 = vld [vmem:[%s7350_s2 + $0x60c] ss:$16 sps:$4 sm:$0xff]  }
  0xa2   : > { %1932 = vmatpush1.bf16.msra.mxu1 %v5189_v19  ;;  %1894 = vmatprep.subr.bf16.mxu0 %v5200_v22  ;;  %v5665_v19 = vld [vmem:[%s5984_s23 + $0x8] ss:$28 sps:$4 sm:$0xff]  }
  0xa3   : > { %1933 = vmatprep.subr.bf16.mxu1 %v5197_v21  ;;  %1963 = vmatprep.mubr.bf16.mxu1 %v6142_v33  ;;  %v5213_v33 = vld [vmem:[%s7350_s2 + $0x468] ss:$16 sps:$4 sm:$0xff]  }
  0xa4   : > { %v5286_v21 = vld [vmem:[%s7352_s4 + $0x68] sm:$0xff]  }
  0xa5   : > { %1895 = vmatpush1.bf16.msra.mxu0 %v5198_v23  ;;  %v5279_v22 = vld [vmem:[%s7350_s2 + $0x608] ss:$16 sps:$4 sm:$0xff]   ;;  %v5288_v23 = vld [vmem:[%s7352_s4 + $0x60] sm:$0xff]  }
  0xa6   : > { %1934 = vmatpush1.bf16.msra.mxu1 %v5195_v51  ;;  %1896 = vmatprep.subr.bf16.mxu0 %v5206_v25  ;;  %v5287_v51 = vld [vmem:[%s7352_s4 + $0x28] sm:$0xff]   ;;  %v5290_v25 = vld [vmem:[%s7352_s4 + $0x58] sm:$0xff]  }
  0xa7   : > { %1935 = vmatprep.subr.bf16.mxu1 %v5203_v24  ;;  %v5289_v24 = vld [vmem:[%s7352_s4 + $0x20] sm:$0xff]  }
  0xa9   : > { %1897 = vmatpush1.bf16.msra.mxu0 %v5204_v4  ;;  %v5666_v4 = vld [vmem:[%s5984_s23 + $0x18] ss:$28 sps:$4 sm:$0xff]   ;;  %s7277_s23 = scalar_lea.vmem [#allocation3], %s4932_s24 }
  0xaa   : > { %1936 = vmatpush1.bf16.msra.mxu1 %v5201_v26  ;;  %1898 = vmatprep.subr.bf16.mxu0 %v5212_v28  ;;  %v5291_v26 = vld [vmem:[%s7352_s4 + $0x18] sm:$0xff]   ;;  %s4297_s16 = sshll.u32 %s7277_s23, 4  ;;  %s7303_s16 = int_to_ptr.vmem [resolvable:$true] %s4297_s16 }
  0xab   : > { %1937 = vmatprep.subr.bf16.mxu1 %v5209_v27  ;;  %v5293_v27 = vld [vmem:[%s7352_s4 + $0x10] sm:$0xff]   ;;  %v5298_v28 = vld [vmem:[%s7352_s4 + $0xb8] sm:$0xff]   ;;  %s5667_s21 = scalar_lea.vmem %s7303_s16, 896  ;;  %p5674_p0 = scmp.lt.s32.totalorder %s7303_s16, %s5672_s12 }
  0xac   : > { %p5668_p11 = scmp.ne.s32.totalorder %s7303_s16, %s5667_s21  ;;  %p5675_p1 = scmp.lt.s32.totalorder %s5673_s14, %s5667_s21 }
  0xad   : > { %1899 = vmatpush1.bf16.msra.mxu0 %v5210_v30  ;;  %v5294_v30 = vld [vmem:[%s7352_s4 + $0x48] sm:$0xff]  }
  0xae   : > { %1938 = vmatpush1.bf16.msra.mxu1 %v5207_v29  ;;  %1900 = vmatprep.subr.bf16.mxu0 %v5218_v32  ;;  %v5299_v29 = vld [vmem:[%s7352_s4 + $0xb0] sm:$0xff]   ;;  %v5296_v32 = vld [vmem:[%s7352_s4 + $0x40] sm:$0xff]   ;;  %p5669_p12 = pnand %p5668_p11, %p5832_p5  ;;  %p5676_p2 = por %p5675_p1, %p5674_p0 }
  0xaf   : > { %1939 = vmatprep.subr.bf16.mxu1 %v5215_v31  ;;  %v5295_v31 = vld [vmem:[%s7352_s4 + $0x8] sm:$0xff]  }
  0xb0   : > { %p5670_p13 = pneg %p5669_p12 }
  0xb1   : > { %1901 = vmatpush1.bf16.msra.mxu0 %v5216_v34  ;;  %v5300_v34 = vld [vmem:[%s7352_s4 + $0xa8] sm:$0xff]  }
  0xb2   : > { %1940 = vmatpush1.bf16.msra.mxu1 %v5213_v33  ;;  %1902 = vmatprep.subr.bf16.mxu0 %v5224_v36  ;;  %v5297_v33 = vld [vmem:[%s7352_s4] sm:$0xff]   ;;  %v5302_v36 = vld [vmem:[%s7352_s4 + $0x98] sm:$0xff]   ;;  %p5677_p3 = pnand %p5676_p2, %p5670_p13 }
  0xb3   : > { %1941 = vmatprep.subr.bf16.mxu1 %v5221_v35  ;;  %v5301_v35 = vld [vmem:[%s7352_s4 + $0xa0] sm:$0xff]  }
  0xb5   : > { %1903 = vmatpush1.bf16.msra.mxu0 %v5222_v38  ;;  %v5304_v38 = vld [vmem:[%s7352_s4 + $0x88] sm:$0xff]  }
  0xb6   : > { %1942 = vmatpush1.bf16.msra.mxu1 %v5219_v37  ;;  %1904 = vmatprep.subr.bf16.mxu0 %v5230_v40  ;;  %v5303_v37 = vld [vmem:[%s7352_s4 + $0x90] sm:$0xff]   ;;  %v5306_v40 = vld [vmem:[%s7352_s4 + $0xc0] sm:$0xff]  }
  0xb7   : > { %1943 = vmatprep.subr.bf16.mxu1 %v5227_v39  ;;  %v5305_v39 = vld [vmem:[%s7352_s4 + $0x80] sm:$0xff]  }
  0xb9   : > { %1905 = vmatpush2.bf16.msra.mxu0 %v5228_v42  ;;  %v634_v42 = vlaneseq }
  0xba   : > { %1944 = vmatpush1.bf16.msra.mxu1 %v5225_v41  ;;  %1906 = vmatprep.subr.bf16.mxu0 %v5236_v44 }
  0xbb   : > { %1945 = vmatprep.subr.bf16.mxu1 %v5233_v43  ;;  %v6557_v44 = vshrl.u32 %v634_v42, 7 }
  0xbd   : > { %1907 = vmatpush2.bf16.msra.mxu0 %v5234_v46 }
  0xbe   : > { %1946 = vmatpush1.bf16.msra.mxu1 %v5231_v45  ;;  %1908 = vmatprep.subr.bf16.mxu0 %v5242_v48  ;;  %v6563_v48 = vsub.s32 0, %v6557_v44 }
  0xbf   : > { %1947 = vmatprep.subr.bf16.mxu1 %v5239_v47  ;;  %v6560_v47 = vsub.s32 1, %v6557_v44 }
  0xc1   : > { %1909 = vmatpush2.bf16.msra.mxu0 %v5240_v50  ;;  %v632_v50 = vld [vmem:[%s7351_s3] sm:$0xf] }
  0xc2   : > { %1948 = vmatpush2.bf16.msra.mxu1 %v5237_v49  ;;  %1910 = vmatprep.subr.bf16.mxu0 %v5248_v53  ;;  %v641_v53 = vrot.slane %v632_v50, %v6560_v47 }
  0xc3   : > { %1949 = vmatprep.subr.bf16.mxu1 %v5245_v52 }
  0xc5   : > { %1911 = vmatpush2.bf16.msra.mxu0 %v5246_v55 }
  0xc6   : > { %1950 = vmatpush2.bf16.msra.mxu1 %v5243_v54  ;;  %1912 = vmatprep.subr.bf16.mxu0 %v5254_v57  ;;  %v637_v54 = vrot.slane %v632_v50, %v6563_v48 }
  0xc7   : > { %1951 = vmatprep.subr.bf16.mxu1 %v5251_v56 }
  0xc9   : > { %1913 = vmatpush2.bf16.msra.mxu0 %v5252_v59 }
  0xca   : > { %1952 = vmatpush2.bf16.msra.mxu1 %v5249_v58  ;;  %1914 = vmatprep.subr.bf16.mxu0 %v5260_v61 }
  0xcb   : > { %1953 = vmatprep.subr.bf16.mxu1 %v5257_v60 }
  0xcd   : > { %1915 = vmatpush2.bf16.msra.mxu0 %v5258_v63 }
  0xce   : > { %1954 = vmatpush2.bf16.msra.mxu1 %v5255_v62  ;;  %1916 = vmatprep.subr.bf16.mxu0 %v5266_v1 }
  0xcf   : > { %1955 = vmatprep.subr.bf16.mxu1 %v5263_v0 }
  0xd1   : > { %1917 = vmatpush2.bf16.msra.mxu0 %v5264_v3 }
  0xd2   : > { %1956 = vmatpush2.bf16.msra.mxu1 %v5261_v2  ;;  %1918 = vmatprep.subr.bf16.mxu0 %v5272_v6 }
  0xd3   : > { %1957 = vmatprep.subr.bf16.mxu1 %v5269_v5 }
  0xd5   : > { %1919 = vmatpush2.bf16.msra.mxu0 %v5270_v8 }
  0xd6   : > { %1958 = vmatpush2.bf16.msra.mxu1 %v5267_v7  ;;  %4888 = vmatprep.subr.bf16.mxu0 %v5282_v12 }
  0xd7   : > { %1959 = vmatprep.subr.bf16.mxu1 %v5275_v10 }
  0xd8   : > { %1921 = vmatmul.mubr.bf16.vlgmr.msra.gmra.mxu0 %v5665_v19 }
  0xd9   : > { %4889 = vmatpush3.bf16.msra.mxu0 %v5283_v14 }
  0xda   : > { %1960 = vmatpush2.bf16.msra.mxu1 %v5273_v13  ;;  %4890 = vmatprep.subr.bf16.mxu0 %v5284_v16 }
  0xdb   : > { %1961 = vmatprep.subr.bf16.mxu1 %v5278_v15 }
  0xdd   : > { %4891 = vmatpush3.bf16.msra.mxu0 %v5285_v18 }
  0xde   : > { %1962 = vmatpush2.bf16.msra.mxu1 %v5276_v17  ;;  %4892 = vmatprep.subr.bf16.mxu0 %v5286_v21 }
  0xdf   : > { %1988 = vmatprep.subr.bf16.mxu1 %v5281_v20 }
  0xe1   : > { %1964 = vmatmul.mubr.bf16.vlgmr.msra.gmra.mxu1 %v6257_v9  ;;  %4893 = vmatpush3.bf16.msra.mxu0 %v5287_v51  ;;  %v5292_v9 = vld [vmem:[%s7352_s4 + $0x50] sm:$0xff]  }
  0xe2   : > { %1989 = vmatpush1.bf16.msra.mxu1 %v5279_v22  ;;  %2006 = vmatprep.mubr.bf16.mxu1 %v5729_v11 }
  0xe3   : > { %2280 = vmatprep.subr.bf16.mxu1 %v5729_v11  ;;  %4894 = vmatprep.subr.bf16.mxu0 %v5288_v23 }
  0xe5   : > { %4895 = vmatpush3.bf16.msra.mxu0 %v5289_v24 }
  0xe6   : > { %4896 = vmatprep.subr.bf16.mxu0 %v5290_v25 }
  0xe9   : > { %4614 = vmatmul.mubr.msk.bf16.vlgmr.msra.gmra.mxu1 %vm1669_vm0, %v5666_v4  ;;  %4897 = vmatpush3.bf16.msra.mxu0 %v5291_v26 }
  0xea   : > { %2281 = vmatpush1.bf16.msra.mxu1 %v5298_v28  ;;  %4898 = vmatprep.subr.bf16.mxu0 %v5292_v9  ;;  %v6572_v28 = vsub.s32 3, %v6557_v44 }
  0xeb   : > { %2282 = vmatprep.subr.bf16.mxu1 %v5729_v11 }
  0xed   : > { %4899 = vmatpush3.bf16.msra.mxu0 %v5293_v27 }
  0xee   : > { %2283 = vmatpush1.bf16.msra.mxu1 %v5299_v29  ;;  %4900 = vmatprep.subr.bf16.mxu0 %v5294_v30  ;;  %v6575_v29 = vsub.s32 2, %v6557_v44 }
  0xef   : > { %2284 = vmatprep.subr.bf16.mxu1 %v5729_v11 }
  0xf1   : > { %4901 = vmatpush3.bf16.msra.mxu0 %v5295_v31 }
  0xf2   : > { %4902 = vmatprep.subr.bf16.mxu0 %v5296_v32  ;;  %2285 = vmatpush1.bf16.msra.mxu1 %v5300_v34  ;;  %v645_v34 = vrot.slane %v632_v50, %v6575_v29 }
  0xf3   : > { %2286 = vmatprep.subr.bf16.mxu1 %v5729_v11 }
  0xf5   : > { %4903 = vmatpush3.bf16.msra.mxu0 %v5297_v33  ;;  %v649_v33 = vrot.slane %v632_v50, %v6572_v28 }
  0xf6   : > { %2287 = vmatpush1.bf16.msra.mxu1 %v5301_v35 }
  0xf7   : > { %2288 = vmatprep.subr.bf16.mxu1 %v5729_v11 }
  0xfa   : > { %2289 = vmatpush1.bf16.msra.mxu1 %v5302_v36 }
  0xfb   : > { %2290 = vmatprep.subr.bf16.mxu1 %v5729_v11 }
  0xfe   : > { %2291 = vmatpush1.bf16.msra.mxu1 %v5303_v37 }
  0xff   : > { %2292 = vmatprep.subr.bf16.mxu1 %v5729_v11 }
 0x102   : > { %2293 = vmatpush1.bf16.msra.mxu1 %v5304_v38 }
 0x103   : > { %2294 = vmatprep.subr.bf16.mxu1 %v5729_v11 }
 0x106   : > { %2295 = vmatpush1.bf16.msra.mxu1 %v5305_v39 }
 0x107   : > { %2310 = vmatprep.subr.bf16.mxu1 %v5729_v11 }
 0x10a   : > { %2311 = vmatpush2.bf16.msra.mxu1 %v5306_v40 }
 0x118   : > { %v1707_v45 = vpop.f32.mrf.mxu0 }
 0x119   : > { %v1750_v41 = vpop.f32.mrf.mxu1  ;;  %v1708_v58 = vadd.f32 %v1707_v45, %v637_v54 }
 0x11a   : > { %v1709_v49 = vpop.f32.mrf.mxu0 }
 0x11b   : > { %v1752_v43 = vpop.f32.mrf.mxu1  ;;  %v1710_v57 = vadd.f32 %v1709_v49, %v641_v53  ;;  %v1751_v1 = vadd.f32 %v1750_v41, %v1708_v58 }
 0x11c   : > { %v1711_v55 = vpop.f32.mrf.mxu0 }
 0x11d   : > { %v1754_v46 = vpop.f32.mrf.mxu1  ;;  %v1712_v60 = vadd.f32 %v1711_v55, %v637_v54  ;;  %v1753_v63 = vadd.f32 %v1752_v43, %v1710_v57 }
 0x11e   : > { %v1713_v59 = vpop.f32.mrf.mxu0 }
 0x11f   : > { %v1756_v52 = vpop.f32.mrf.mxu1  ;;  %v1714_v0 = vadd.f32 %v1713_v59, %v641_v53  ;;  %v1755_v3 = vadd.f32 %v1754_v46, %v1712_v60 }
 0x121   : > { %v1836_v56 = vpop.f32.mrf.mxu1  ;;  %v1757_v10 = vadd.f32 %v1756_v52, %v1714_v0  ;;  %v5307_v0 = vld [vmem:[%s7354_s6 + $0xe0] ss:$16 sps:$4 sm:$0xff]  }
 0x123   : > { %v1838_v61 = vpop.f32.mrf.mxu1 }
 0x125   : > { %v1840_v6 = vpop.f32.mrf.mxu1 }
 0x127   : > { %v1842_v17 = vpop.f32.mrf.mxu1 }
 0x158   : > { %v1793_v62 = vpop.f32.mrf.mxu0 }
 0x159   : > { %v1794_v7 = vadd.f32 %v1793_v62, %v1751_v1  ;;  %v5309_v1 = vld [vmem:[%s7354_s6 + $0xe4] ss:$16 sps:$4 sm:$0xff]  }
 0x15a   : > { %v1795_v2 = vpop.f32.mrf.mxu0  ;;  %2560 = vmatprep.subr.bf16.mxu0 %v5309_v1 }
 0x15b   : > { %v1796_v5 = vadd.f32 %v1795_v2, %v1753_v63  ;;  %v1837_v18 = vadd.f32 %v1836_v56, %v1794_v7 }
 0x15c   : > { %v1797_v8 = vpop.f32.mrf.mxu0 }
 0x15d   : > { %v1798_v12 = vadd.f32 %v1797_v8, %v1755_v3  ;;  %v1839_v14 = vadd.f32 %v1838_v61, %v1796_v5  ;;  %v2017_v51 = vmax.f32 %v1837_v18, 0.0  ;;  %v5312_v3 = vld [vmem:[%s7354_s6 + $0xec] ss:$16 sps:$4 sm:$0xff]   ;;  %v5316_v18 = vld [vmem:[%s7354_s6 + $0xc8] ss:$16 sps:$4 sm:$0xff]  }
 0x15e   : > { %v1799_v13 = vpop.f32.mrf.mxu0  ;;  %2603 = vmatprep.subr.bf16.mxu1 %v5312_v3 }
 0x15f   : > { %v1841_v15 = vadd.f32 %v1840_v6, %v1798_v12  ;;  %v1800_v16 = vadd.f32 %v1799_v13, %v1757_v10  ;;  %v2018_v21 = vmax.f32 %v1839_v14, 0.0  ;;  %v5310_v10 = vld [vmem:[%s7354_s6 + $0xe8] ss:$16 sps:$4 sm:$0xff]   ;;  %v2323_v13 = vld [vmem:[%s418_s13] sm:$0xff] }
 0x160   : > { %v2324_v14 = vld [vmem:[%s418_s13 + $0x8] sm:$0xff]  ;;  %s7308_s13 = scalar_lea.sflag [#allocation4], %s397_s29 }
 0x161   : > { %v1843_v19 = vadd.f32 %v1842_v17, %v1800_v16  ;;  %v2021_v20 = vmax.f32 %v1841_v15, 0.0  ;;  %v1879_v25 = vpop.f32.mrf.mxu1  ;;  %v5315_v15 = vld [vmem:[%s7354_s6 + $0xc4] ss:$16 sps:$4 sm:$0xff]   ;;  %v5730_v16 = vmov 0.0   ;;  %v5313_v17 = vld [vmem:[%s7354_s6 + $0xc0] ss:$16 sps:$4 sm:$0xff]  }
 0x162   : > { %v1880_v40 = vadd.f32 %v1879_v25, %v645_v34  ;;  %2321 = vst [vmem:[#allocation2] sm:$0xff] %v5730_v16  ;;  %2322 = vst [vmem:[#allocation2 + $0x8] sm:$0xff] %v5730_v16  ;;  %v5325_v25 = vld [vmem:[%s7354_s6 + $0x80] ss:$16 sps:$4 sm:$0xff]  }
 0x163   : > { %v2022_v22 = vmax.f32 %v1843_v19, 0.0  ;;  %v2025_v24 = vpack.c.bf16 %v2021_v20, %v2017_v51  ;;  %v1881_v26 = vpop.f32.mrf.mxu1  ;;  %2326 = vst.msk [vmem:[#allocation2] sm:$0xff] %vm2325_vm1, %v2323_v13  ;;  %2327 = vst.msk [vmem:[#allocation2 + $0x8] sm:$0xff] %vm2325_vm1, %v2324_v14  ;;  %v5318_v19 = vld [vmem:[%s7354_s6 + $0xcc] ss:$16 sps:$4 sm:$0xff]  }
 0x164   : > { %v1882_v38 = vadd.f32 %v1881_v26, %v649_v33  ;;  %v5321_v20 = vld [vmem:[%s7354_s6 + $0xa4] ss:$16 sps:$4 sm:$0xff]   ;;  %v5322_v51 = vld [vmem:[%s7354_s6 + $0xa8] ss:$16 sps:$4 sm:$0xff]  }
 0x165   : > { %v2026_v23 = vpack.c.bf16 %v2022_v22, %v2018_v21  ;;  %v1883_v9 = vpop.f32.mrf.mxu1  ;;  %v5324_v21 = vld [vmem:[%s7354_s6 + $0xac] ss:$16 sps:$4 sm:$0xff]   ;;  %v5319_v22 = vld [vmem:[%s7354_s6 + $0xa0] ss:$16 sps:$4 sm:$0xff]   ;;  %v5328_v26 = vld [vmem:[%s7354_s6 + $0x88] ss:$16 sps:$4 sm:$0xff]  }
 0x166   : > { %v1884_v39 = vadd.f32 %v1883_v9, %v645_v34  ;;  %v5333_v9 = vld [vmem:[%s7354_s6 + $0x64] ss:$16 sps:$4 sm:$0xff]   ;;  %v5340_v34 = vld [vmem:[%s7354_s6 + $0x48] ss:$16 sps:$4 sm:$0xff]  }
 0x167   : > { %2271 = vmatprep.mubr.bf16.mxu0 %v2026_v23  ;;  %v1885_v27 = vpop.f32.mrf.mxu1  ;;  %v5327_v23 = vld [vmem:[%s7354_s6 + $0x84] ss:$16 sps:$4 sm:$0xff]  }
 0x168   : > { %2272 = vmatmul.mubr.bf16.vlgmr.msra.gmra.mxu0 %v2025_v24  ;;  %v1886_v45 = vadd.f32 %v1885_v27, %v649_v33  ;;  %v5330_v24 = vld [vmem:[%s7354_s6 + $0x8c] ss:$16 sps:$4 sm:$0xff]   ;;  %v5331_v27 = vld [vmem:[%s7354_s6 + $0x60] ss:$16 sps:$4 sm:$0xff]  }
 0x169   : > { %2592 = vmatprep.mubr.bf16.mxu0 %v5729_v11  ;;  %2561 = vmatpush1.bf16.msra.mxu0 %v5307_v0  ;;  %v5337_v33 = vld [vmem:[%s7354_s6 + $0x40] ss:$16 sps:$4 sm:$0xff]  }
 0x16a   : > { %2562 = vmatprep.subr.bf16.mxu0 %v5315_v15 }
 0x16d   : > { %2563 = vmatpush1.bf16.msra.mxu0 %v5313_v17 }
 0x16e   : > { %2564 = vmatprep.subr.bf16.mxu0 %v5321_v20 }
 0x171   : > { %2565 = vmatpush1.bf16.msra.mxu0 %v5319_v22  ;;  %v5387_v22 = vld [vmem:[%s7356_s8 + $0x4d4] ss:$28 sps:$4 sm:$0xff]  }
 0x172   : > { %2566 = vmatprep.subr.bf16.mxu0 %v5327_v23  ;;  %v5385_v23 = vld [vmem:[%s7356_s8 + $0x4d0] ss:$28 sps:$4 sm:$0xff]  }
 0x175   : > { %2567 = vmatpush1.bf16.msra.mxu0 %v5325_v25  ;;  %v5393_v25 = vld [vmem:[%s7356_s8 + $0x49c] ss:$28 sps:$4 sm:$0xff]  }
 0x176   : > { %2568 = vmatprep.subr.bf16.mxu0 %v5333_v9  ;;  %v5391_v9 = vld [vmem:[%s7356_s8 + $0x498] ss:$28 sps:$4 sm:$0xff]  }
 0x179   : > { %2569 = vmatpush1.bf16.msra.mxu0 %v5331_v27  ;;  %v5399_v27 = vld [vmem:[%s7356_s8 + $0x464] ss:$28 sps:$4 sm:$0xff]  }
 0x198   : > { %v1922_v4 = vpop.f32.mrf.mxu0 }
 0x199   : > { %v1923_v52 = vadd.f32 %v1922_v4, %v1880_v40  ;;  %v5336_v4 = vld [vmem:[%s7354_s6 + $0x6c] ss:$16 sps:$4 sm:$0xff]  }
 0x19a   : > { %v1924_v30 = vpop.f32.mrf.mxu0  ;;  %v5354_v40 = vld [vmem:[%s7354_s6 + $0xc] ss:$16 sps:$4 sm:$0xff]  }
 0x19b   : > { %v1925_v46 = vadd.f32 %v1924_v30, %v1882_v38  ;;  %v5334_v30 = vld [vmem:[%s7354_s6 + $0x68] ss:$16 sps:$4 sm:$0xff]  }
 0x19c   : > { %v1926_v35 = vpop.f32.mrf.mxu0  ;;  %v5346_v38 = vld [vmem:[%s7354_s6 + $0x28] ss:$16 sps:$4 sm:$0xff]  }
 0x19d   : > { %v1927_v49 = vadd.f32 %v1926_v35, %v1884_v39  ;;  %v5345_v35 = vld [vmem:[%s7354_s6 + $0x24] ss:$16 sps:$4 sm:$0xff]  }
 0x19e   : > { %v1928_v41 = vpop.f32.mrf.mxu0  ;;  %v5351_v39 = vld [vmem:[%s7354_s6 + $0x4] ss:$16 sps:$4 sm:$0xff]  }
 0x19f   : > { %v1929_v54 = vadd.f32 %v1928_v41, %v1886_v45  ;;  %v5349_v41 = vld [vmem:[%s7354_s6] ss:$16 sps:$4 sm:$0xff]   ;;  %v5357_v45 = vld [vmem:[%s7356_s8 + $0x18c] ss:$28 sps:$4 sm:$0xff]  }
 0x1a1   : > { %v1965_v31 = vpop.f32.mrf.mxu1 }
 0x1a2   : > { %v1966_v57 = vadd.f32 %v1965_v31, %v1923_v52  ;;  %v5339_v31 = vld [vmem:[%s7354_s6 + $0x44] ss:$16 sps:$4 sm:$0xff]  }
 0x1a3   : > { %v1967_v32 = vpop.f32.mrf.mxu1  ;;  %2570 = vmatprep.subr.bf16.mxu0 %v5339_v31  ;;  %v5397_v31 = vld [vmem:[%s7356_s8 + $0x460] ss:$28 sps:$4 sm:$0xff]  }
 0x1a4   : > { %v1968_v55 = vadd.f32 %v1967_v32, %v1925_v46  ;;  %v5342_v32 = vld [vmem:[%s7354_s6 + $0x4c] ss:$16 sps:$4 sm:$0xff]   ;;  %2571 = vmatpush1.bf16.msra.mxu0 %v5337_v33 }
 0x1a5   : > { %v1969_v36 = vpop.f32.mrf.mxu1  ;;  %2572 = vmatprep.subr.bf16.mxu0 %v5345_v35  ;;  %v5381_v46 = vld [vmem:[%s7356_s8 + $0x50c] ss:$28 sps:$4 sm:$0xff]  }
 0x1a6   : > { %v1970_v56 = vadd.f32 %v1969_v36, %v1927_v49  ;;  %v5348_v36 = vld [vmem:[%s7354_s6 + $0x2c] ss:$16 sps:$4 sm:$0xff]   ;;  %v5403_v35 = vld [vmem:[%s7356_s8 + $0x428] ss:$28 sps:$4 sm:$0xff]  }
 0x1a7   : > { %v1971_v37 = vpop.f32.mrf.mxu1  ;;  %v5405_v33 = vld [vmem:[%s7356_s8 + $0x42c] ss:$28 sps:$4 sm:$0xff]  }
 0x1a8   : > { %v1972_v59 = vadd.f32 %v1971_v37, %v1929_v54  ;;  %v5343_v37 = vld [vmem:[%s7354_s6 + $0x20] ss:$16 sps:$4 sm:$0xff]  }
 0x1a9   : > { %v2008_v43 = vpop.f32.mrf.mxu1  ;;  %2573 = vmatpush1.bf16.msra.mxu0 %v5343_v37  ;;  %v5411_v37 = vld [vmem:[%s7356_s8 + $0x3f4] ss:$28 sps:$4 sm:$0xff]  }
 0x1aa   : > { %v2009_v61 = vadd.f32 %v2008_v43, %v1966_v57  ;;  %v5352_v43 = vld [vmem:[%s7354_s6 + $0x8] ss:$16 sps:$4 sm:$0xff]   ;;  %2574 = vmatprep.subr.bf16.mxu0 %v5351_v39  ;;  %v2329_v57 = vand.u32 127, %v634_v42  ;;  %v5409_v39 = vld [vmem:[%s7356_s8 + $0x3f0] ss:$28 sps:$4 sm:$0xff]  }
 0x1ab   : > { %v2010_v53 = vpop.f32.mrf.mxu1 }
 0x1ac   : > { %v2011_v50 = vadd.f32 %v2010_v53, %v1968_v55  ;;  %v2019_v7 = vmax.f32 %v2009_v61, 0.0  ;;  %vm2330_vm2 = vcmp.lt.s32.totalorder %v2329_v57, 20  ;;  %v5400_v57 = vld [vmem:[%s7356_s8 + $0x2a0] ss:$28 sps:$4 sm:$0xff]  }
 0x1ad   : > { %v2012_v58 = vpop.f32.mrf.mxu1  ;;  %2575 = vmatpush1.bf16.msra.mxu0 %v5349_v41  ;;  %v5373_v41 = vld [vmem:[%s7356_s8 + $0x38] ss:$28 sps:$4 sm:$0xff]  }
 0x1ae   : > { %v2013_v60 = vadd.f32 %v2012_v58, %v1970_v56  ;;  %v2020_v5 = vmax.f32 %v2011_v50, 0.0  ;;  %3798 = vmatprep.subr.bf16.mxu0 %v5357_v45  ;;  %v4615_v56 = vld [vmem:[%s7353_s5] ss:$0 sm:$0xff] }
 0x1af   : > { %v2014_v62 = vpop.f32.mrf.mxu1  ;;  %v5376_v45 = vld [vmem:[%s7356_s8] ss:$28 sps:$4 sm:$0xff]  }
 0x1b0   : > { %v2015_v63 = vadd.f32 %v2014_v62, %v1972_v59  ;;  %v2023_v2 = vmax.f32 %v2013_v60, 0.0 }
 0x1b2   : > { %v2024_v6 = vmax.f32 %v2015_v63, 0.0  ;;  %v2027_v12 = vpack.c.bf16 %v2023_v2, %v2019_v7 }
 0x1b4   : > { %v2028_v8 = vpack.c.bf16 %v2024_v6, %v2020_v5 }
 0x1b6   : > { %4641 = vmatprep.mubr.msk.bf16.mxu1 %vm1669_vm0, %v2028_v8  ;;  %v2331_v8 = vld [vmem:[#allocation2] sm:$0xff] }
 0x1b7   : > { %2313 = vmatmul.mubr.bf16.vlgmr.msra.gmra.mxu1 %v2027_v12  ;;  %v2332_v12 = vld [vmem:[#allocation2 + $0x8] sm:$0xff] }
 0x1b8   : > { %2604 = vmatpush1.bf16.msra.mxu1 %v5310_v10  ;;  %2635 = vmatprep.mubr.bf16.mxu1 %v5729_v11 }
 0x1b9   : > { %2605 = vmatprep.subr.bf16.mxu1 %v5318_v19  ;;  %v5379_v19 = vld [vmem:[%s7356_s8 + $0x508] ss:$28 sps:$4 sm:$0xff]  }
 0x1bc   : > { %2606 = vmatpush1.bf16.msra.mxu1 %v5316_v18  ;;  %v5355_v18 = vld [vmem:[%s7356_s8 + $0x188] ss:$28 sps:$4 sm:$0xff]  }
 0x1bd   : > { %2607 = vmatprep.subr.bf16.mxu1 %v5324_v21  ;;  %v5360_v21 = vld [vmem:[%s7356_s8 + $0x154] ss:$28 sps:$4 sm:$0xff]  }
 0x1c0   : > { %2608 = vmatpush1.bf16.msra.mxu1 %v5322_v51  ;;  %v5358_v51 = vld [vmem:[%s7356_s8 + $0x150] ss:$28 sps:$4 sm:$0xff]  }
 0x1c1   : > { %2609 = vmatprep.subr.bf16.mxu1 %v5330_v24  ;;  %v5363_v24 = vld [vmem:[%s7356_s8 + $0x11c] ss:$28 sps:$4 sm:$0xff]  }
 0x1c4   : > { %2610 = vmatpush1.bf16.msra.mxu1 %v5328_v26  ;;  %v5361_v26 = vld [vmem:[%s7356_s8 + $0x118] ss:$28 sps:$4 sm:$0xff]  }
 0x1c5   : > { %2611 = vmatprep.subr.bf16.mxu1 %v5336_v4  ;;  %v5366_v4 = vld [vmem:[%s7356_s8 + $0xe4] ss:$28 sps:$4 sm:$0xff]  }
 0x1c8   : > { %2612 = vmatpush1.bf16.msra.mxu1 %v5334_v30  ;;  %v5364_v30 = vld [vmem:[%s7356_s8 + $0xe0] ss:$28 sps:$4 sm:$0xff]  }
 0x1c9   : > { %2613 = vmatprep.subr.bf16.mxu1 %v5342_v32  ;;  %v5369_v32 = vld [vmem:[%s7356_s8 + $0xac] ss:$28 sps:$4 sm:$0xff]  }
 0x1cc   : > { %2614 = vmatpush1.bf16.msra.mxu1 %v5340_v34  ;;  %v5367_v34 = vld [vmem:[%s7356_s8 + $0xa8] ss:$28 sps:$4 sm:$0xff]  }
 0x1cd   : > { %2615 = vmatprep.subr.bf16.mxu1 %v5348_v36  ;;  %v5372_v36 = vld [vmem:[%s7356_s8 + $0x74] ss:$28 sps:$4 sm:$0xff]  }
 0x1d0   : > { %2616 = vmatpush1.bf16.msra.mxu1 %v5346_v38  ;;  %v5370_v38 = vld [vmem:[%s7356_s8 + $0x70] ss:$28 sps:$4 sm:$0xff]  }
 0x1d1   : > { %2617 = vmatprep.subr.bf16.mxu1 %v5354_v40  ;;  %v5375_v40 = vld [vmem:[%s7356_s8 + $0x3c] ss:$28 sps:$4 sm:$0xff]  }
 0x1d4   : > { %2618 = vmatpush1.bf16.msra.mxu1 %v5352_v43  ;;  %v5378_v43 = vld [vmem:[%s7356_s8 + $0x4] ss:$28 sps:$4 sm:$0xff]  }
 0x1d5   : > { %3841 = vmatprep.subr.bf16.mxu1 %v5381_v46  ;;  %v5384_v46 = vld [vmem:[%s7356_s8 + $0x34c] ss:$28 sps:$4 sm:$0xff]  }
 0x228   : > { %v4904_v49 = vpop.f32.mrf.mxu0 }
 0x22a   : > { %v4905_v52 = vpop.f32.mrf.mxu0 }
 0x22b   : > { %v4906_v54 = vadd.f32 %v4905_v52, %v4904_v49  ;;  %v5382_v49 = vld [vmem:[%s7356_s8 + $0x348] ss:$28 sps:$4 sm:$0xff]   ;;  %v5390_v52 = vld [vmem:[%s7356_s8 + $0x314] ss:$28 sps:$4 sm:$0xff]  }
 0x22c   : > { %v4907_v53 = vpop.f32.mrf.mxu0 }
 0x22d   : > { %v2274_v59 = vadd.f32 %v4906_v54, %v4615_v56  ;;  %v5396_v54 = vld [vmem:[%s7356_s8 + $0x2dc] ss:$28 sps:$4 sm:$0xff]  }
 0x22e   : > { %v4908_v55 = vpop.f32.mrf.mxu0 }
 0x22f   : > { %v4909_v58 = vadd.f32 %v4908_v55, %v4907_v53  ;;  %v5388_v53 = vld [vmem:[%s7356_s8 + $0x310] ss:$28 sps:$4 sm:$0xff]   ;;  %v5394_v55 = vld [vmem:[%s7356_s8 + $0x2d8] ss:$28 sps:$4 sm:$0xff]  }
 0x231   : > { %v2277_v63 = vadd.f32 %v4909_v58, %v4615_v56  ;;  %v5402_v56 = vld [vmem:[%s7356_s8 + $0x2a4] ss:$28 sps:$4 sm:$0xff]   ;;  %v5408_v58 = vld [vmem:[%s7356_s8 + $0x26c] ss:$28 sps:$4 sm:$0xff]  }
 0x277   : > { %v2314_v50 = vpop.f32.mrf.mxu1 }
 0x278   : > { %v2315_v60 = vadd.f32 %v2314_v50, %v2274_v59  ;;  %v5406_v59 = vld [vmem:[%s7356_s8 + $0x268] ss:$28 sps:$4 sm:$0xff]   ;;  %v5414_v50 = vld [vmem:[%s7356_s8 + $0x234] ss:$28 sps:$4 sm:$0xff]  }
 0x279   : > { %v2316_v61 = vpop.f32.mrf.mxu1 }
 0x27a   : > { %v2333_v62 = vsel %vm2330_vm2, %v2315_v60, 0.0  ;;  %4275 = vst [vmem:[%s425_s15] sm:$0xff] %v2315_v60  ;;  %v5412_v61 = vld [vmem:[%s7356_s8 + $0x230] ss:$28 sps:$4 sm:$0xff]  }
 0x27b   : > { %v2335_v0 = vmul.f32 1.442695, %v2333_v62  ;;  %v2317_v1 = vpop.f32.mrf.mxu1  ;;  %v5415_v62 = vld [vmem:[%s7356_s8 + $0x3b8] ss:$28 sps:$4 sm:$0xff]  }
 0x27c   : > { %v2318_v2 = vadd.f32 %v2317_v1, %v2277_v63  ;;  %v5420_v63 = vld [vmem:[%s7356_s8 + $0x1fc] ss:$28 sps:$4 sm:$0xff]  }
 0x27d   : > { %5605 = vpow2.f32 %v2335_v0  ;;  %v2319_v42 = vpop.f32.mrf.mxu1  ;;  %v5423_v0 = vld [vmem:[%s7356_s8 + $0x384] ss:$28 sps:$4 sm:$0xff]   ;;  %v5418_v1 = vld [vmem:[%s7356_s8 + $0x1f8] ss:$28 sps:$4 sm:$0xff]  }
 0x27e   : > { %v2334_v3 = vsel %vm2330_vm2, %v2318_v2, 0.0  ;;  %4276 = vst [vmem:[%s425_s15 + $0x8] sm:$0xff] %v2318_v2  ;;  %v5426_v42 = vld [vmem:[%s7356_s8 + $0x1c4] ss:$28 sps:$4 sm:$0xff]  }
 0x27f   : > { %v2337_v5 = vmul.f32 1.442695, %v2334_v3  ;;  %v5429_v3 = vld [vmem:[%s7356_s8 + $0x544] ss:$28 sps:$4 sm:$0xff]  }
 0x281   : > { %5607 = vpow2.f32 %v2337_v5  ;;  %v5424_v5 = vld [vmem:[%s7356_s8 + $0x1c0] ss:$28 sps:$4 sm:$0xff]  }
 0x28a   : > { %v5606_v6 = vpop.eup %5605 }
 0x28b   : > { %v2339_v7 = vmul.f32 0.5, %v5606_v6  ;;  %v5427_v6 = vld [vmem:[%s7356_s8 + $0x540] ss:$28 sps:$4 sm:$0xff]  }
 0x28d   : > { %v2341_v13 = vmul.f32 %v2339_v7, %v2331_v8  ;;  %v5432_v7 = vld [vmem:[%s7356_s8 + $0x194] ss:$28 sps:$4 sm:$0xff]  }
 0x28e   : > { %v5608_v10 = vpop.eup %5607  ;;  %v5435_v8 = vld [vmem:[%s7356_s8 + $0x514] ss:$28 sps:$4 sm:$0xff]  }
 0x28f   : > { %v2340_v14 = vmul.f32 0.5, %v5608_v10  ;;  %v2343_v16 = vsel %vm2330_vm2, %v2341_v13, %v2315_v60  ;;  %v5417_v60 = vld [vmem:[%s7356_s8 + $0x3bc] ss:$28 sps:$4 sm:$0xff]   ;;  %v2378_v10 = vld [vmem:[%s7355_s7] sm:$0xf] }
 0x291   : > { %v2342_v15 = vmul.f32 %v2340_v14, %v2332_v12  ;;  %v2387_v14 = vrot.slane %v2378_v10, %v6560_v47 }
 0x293   : > { %v2344_v17 = vsel %vm2330_vm2, %v2342_v15, %v2318_v2  ;;  %v5421_v2 = vld [vmem:[%s7356_s8 + $0x380] ss:$28 sps:$4 sm:$0xff]   ;;  %v2395_v15 = vrot.slane %v2378_v10, %v6572_v28 }
 0x294   : > { %v2345_v20 = vpack.c.bf16 %v2344_v17, %v2343_v16  ;;  %v2383_v16 = vrot.slane %v2378_v10, %v6563_v48  ;;  %v2391_v17 = vrot.slane %v2378_v10, %v6575_v29  ;;  %v5469_v10 = vld [vmem:[%s7356_s8 + $0x3c0] ss:$28 sps:$4 sm:$0xff]  }
 0x296   : > { %2593 = vmatmul.mubr.bf16.vlgmr.msra.gmra.mxu0 %v2345_v20  ;;  %2636 = vmatmul.mubr.bf16.vlgmr.msra.gmra.mxu1 %v2345_v20 }
 0x297   : > { %3799 = vmatpush1.bf16.msra.mxu0 %v5355_v18  ;;  %3842 = vmatpush1.bf16.msra.mxu1 %v5379_v19 }
 0x298   : > { %3800 = vmatprep.subr.bf16.mxu0 %v5360_v21  ;;  %3843 = vmatprep.subr.bf16.mxu1 %v5387_v22 }
 0x29b   : > { %3801 = vmatpush1.bf16.msra.mxu0 %v5358_v51  ;;  %3844 = vmatpush1.bf16.msra.mxu1 %v5385_v23 }
 0x29c   : > { %3802 = vmatprep.subr.bf16.mxu0 %v5363_v24  ;;  %3845 = vmatprep.subr.bf16.mxu1 %v5393_v25 }
 0x29f   : > { %3803 = vmatpush1.bf16.msra.mxu0 %v5361_v26  ;;  %3846 = vmatpush1.bf16.msra.mxu1 %v5391_v9 }
 0x2a0   : > { %3804 = vmatprep.subr.bf16.mxu0 %v5366_v4  ;;  %3847 = vmatprep.subr.bf16.mxu1 %v5399_v27 }
 0x2a3   : > { %3805 = vmatpush1.bf16.msra.mxu0 %v5364_v30  ;;  %3848 = vmatpush1.bf16.msra.mxu1 %v5397_v31 }
 0x2a4   : > { %3806 = vmatprep.subr.bf16.mxu0 %v5369_v32  ;;  %3849 = vmatprep.subr.bf16.mxu1 %v5405_v33 }
 0x2a7   : > { %3807 = vmatpush1.bf16.msra.mxu0 %v5367_v34  ;;  %3850 = vmatpush1.bf16.msra.mxu1 %v5403_v35 }
 0x2a8   : > { %3808 = vmatprep.subr.bf16.mxu0 %v5372_v36  ;;  %3851 = vmatprep.subr.bf16.mxu1 %v5411_v37 }
 0x2ab   : > { %3809 = vmatpush1.bf16.msra.mxu0 %v5370_v38  ;;  %3852 = vmatpush1.bf16.msra.mxu1 %v5409_v39 }
 0x2ac   : > { %3810 = vmatprep.subr.bf16.mxu0 %v5375_v40  ;;  %3853 = vmatprep.subr.bf16.mxu1 %v5417_v60  ;;  %v5448_v60 = vld [vmem:[%s7356_s8 + $0xe8] ss:$28 sps:$4 sm:$0xff]  }
 0x2af   : > { %3811 = vmatpush1.bf16.msra.mxu0 %v5373_v41  ;;  %3854 = vmatpush1.bf16.msra.mxu1 %v5415_v62  ;;  %v5430_v41 = vld [vmem:[%s7356_s8 + $0x190] ss:$28 sps:$4 sm:$0xff]  }
 0x2b0   : > { %3812 = vmatprep.subr.bf16.mxu0 %v5378_v43  ;;  %3855 = vmatprep.subr.bf16.mxu1 %v5423_v0  ;;  %v5433_v43 = vld [vmem:[%s7356_s8 + $0x510] ss:$28 sps:$4 sm:$0xff]  }
 0x2b1   : > { %v5456_v62 = vld [vmem:[%s7356_s8 + $0xb4] ss:$28 sps:$4 sm:$0xff]  }
 0x2b2   : > { %v5454_v0 = vld [vmem:[%s7356_s8 + $0xb0] ss:$28 sps:$4 sm:$0xff]  }
 0x2b3   : > { %3813 = vmatpush1.bf16.msra.mxu0 %v5376_v45  ;;  %3856 = vmatpush1.bf16.msra.mxu1 %v5421_v2  ;;  %v5462_v2 = vld [vmem:[%s7356_s8 + $0x7c] ss:$28 sps:$4 sm:$0xff]  }
 0x2b4   : > { %3814 = vmatprep.subr.bf16.mxu0 %v5384_v46  ;;  %3871 = vmatprep.subr.bf16.mxu1 %v5429_v3  ;;  %v5460_v3 = vld [vmem:[%s7356_s8 + $0x78] ss:$28 sps:$4 sm:$0xff]  }
 0x2b7   : > { %3815 = vmatpush2.bf16.msra.mxu0 %v5382_v49  ;;  %3872 = vmatpush2.bf16.msra.mxu1 %v5427_v6  ;;  %v5438_v49 = vld [vmem:[%s7356_s8 + $0x15c] ss:$28 sps:$4 sm:$0xff]   ;;  %v5468_v6 = vld [vmem:[%s7356_s8 + $0x44] ss:$28 sps:$4 sm:$0xff]  }
 0x2b8   : > { %3816 = vmatprep.subr.bf16.mxu0 %v5390_v52  ;;  %3884 = vmatprep.subr.bf16.mxu1 %v5432_v7  ;;  %v5441_v52 = vld [vmem:[%s7356_s8 + $0x4dc] ss:$28 sps:$4 sm:$0xff]   ;;  %v5471_v7 = vld [vmem:[%s7356_s8 + $0x3c4] ss:$28 sps:$4 sm:$0xff]  }
 0x2bb   : > { %3817 = vmatpush2.bf16.msra.mxu0 %v5388_v53  ;;  %v5436_v53 = vld [vmem:[%s7356_s8 + $0x158] ss:$28 sps:$4 sm:$0xff]  }
 0x2bc   : > { %3818 = vmatprep.subr.bf16.mxu0 %v5396_v54  ;;  %v5439_v54 = vld [vmem:[%s7356_s8 + $0x4d8] ss:$28 sps:$4 sm:$0xff]  }
 0x2bf   : > { %3819 = vmatpush2.bf16.msra.mxu0 %v5394_v55  ;;  %v5444_v55 = vld [vmem:[%s7356_s8 + $0x124] ss:$28 sps:$4 sm:$0xff]  }
 0x2c0   : > { %3820 = vmatprep.subr.bf16.mxu0 %v5402_v56  ;;  %v5447_v56 = vld [vmem:[%s7356_s8 + $0x4a4] ss:$28 sps:$4 sm:$0xff]  }
 0x2c3   : > { %3821 = vmatpush2.bf16.msra.mxu0 %v5400_v57  ;;  %v5442_v57 = vld [vmem:[%s7356_s8 + $0x120] ss:$28 sps:$4 sm:$0xff]  }
 0x2c4   : > { %3822 = vmatprep.subr.bf16.mxu0 %v5408_v58  ;;  %v5445_v58 = vld [vmem:[%s7356_s8 + $0x4a0] ss:$28 sps:$4 sm:$0xff]  }
 0x2c7   : > { %3823 = vmatpush2.bf16.msra.mxu0 %v5406_v59  ;;  %v5450_v59 = vld [vmem:[%s7356_s8 + $0xec] ss:$28 sps:$4 sm:$0xff]  }
 0x2c8   : > { %3824 = vmatprep.subr.bf16.mxu0 %v5414_v50  ;;  %v5453_v50 = vld [vmem:[%s7356_s8 + $0x46c] ss:$28 sps:$4 sm:$0xff]  }
 0x2cb   : > { %3825 = vmatpush2.bf16.msra.mxu0 %v5412_v61  ;;  %v5451_v61 = vld [vmem:[%s7356_s8 + $0x468] ss:$28 sps:$4 sm:$0xff]  }
 0x2cc   : > { %3826 = vmatprep.subr.bf16.mxu0 %v5420_v63  ;;  %v5459_v63 = vld [vmem:[%s7356_s8 + $0x434] ss:$28 sps:$4 sm:$0xff]  }
 0x2cf   : > { %3827 = vmatpush2.bf16.msra.mxu0 %v5418_v1  ;;  %v5457_v1 = vld [vmem:[%s7356_s8 + $0x430] ss:$28 sps:$4 sm:$0xff]  }
 0x2d0   : > { %3828 = vmatprep.subr.bf16.mxu0 %v5426_v42  ;;  %v5465_v42 = vld [vmem:[%s7356_s8 + $0x3fc] ss:$28 sps:$4 sm:$0xff]  }
 0x2d3   : > { %3829 = vmatpush2.bf16.msra.mxu0 %v5424_v5  ;;  %v5463_v5 = vld [vmem:[%s7356_s8 + $0x3f8] ss:$28 sps:$4 sm:$0xff]  }
 0x2d4   : > { %3927 = vmatprep.subr.bf16.mxu0 %v5435_v8  ;;  %v5466_v8 = vld [vmem:[%s7356_s8 + $0x40] ss:$28 sps:$4 sm:$0xff]  }
 0x356   : > { %v2594_v12 = vpop.f32.mrf.mxu0  ;;  %v2637_v13 = vpop.f32.mrf.mxu1 }
 0x357   : > { %v2595_v25 = vadd.f32 %v2594_v12, %v2383_v16  ;;  %v2638_v26 = vadd.f32 %v2637_v13, %v2391_v17  ;;  %v5474_v12 = vld [vmem:[%s7356_s8 + $0xc] ss:$28 sps:$4 sm:$0xff]  }
 0x358   : > { %v2596_v18 = vpop.f32.mrf.mxu0  ;;  %v2639_v19 = vpop.f32.mrf.mxu1  ;;  %v5477_v13 = vld [vmem:[%s7356_s8 + $0x38c] ss:$28 sps:$4 sm:$0xff]  }
 0x359   : > { %v2597_v22 = vadd.f32 %v2596_v18, %v2387_v14  ;;  %v2640_v51 = vadd.f32 %v2639_v19, %v2395_v15  ;;  %v2646_v37 = vmax.f32 %v2595_v25, 0.0  ;;  %v2648_v38 = vmax.f32 %v2638_v26, 0.0  ;;  %v5478_v18 = vld [vmem:[%s7356_s8 + $0x350] ss:$28 sps:$4 sm:$0xff]   ;;  %v5481_v19 = vld [vmem:[%s7356_s8 + $0x548] ss:$28 sps:$4 sm:$0xff]  }
 0x35a   : > { %v2598_v20 = vpop.f32.mrf.mxu0  ;;  %v2641_v21 = vpop.f32.mrf.mxu1  ;;  %v5490_v25 = vld [vmem:[%s7356_s8 + $0x2e0] ss:$28 sps:$4 sm:$0xff]  }
 0x35b   : > { %v2599_v23 = vadd.f32 %v2598_v20, %v2383_v16  ;;  %v2642_v24 = vadd.f32 %v2641_v21, %v2391_v17  ;;  %v2647_v33 = vmax.f32 %v2597_v22, 0.0  ;;  %v2649_v34 = vmax.f32 %v2640_v51, 0.0  ;;  %v5480_v16 = vld [vmem:[%s7356_s8 + $0x354] ss:$28 sps:$4 sm:$0xff]   ;;  %v5483_v17 = vld [vmem:[%s7356_s8 + $0x54c] ss:$28 sps:$4 sm:$0xff]  }
 0x35c   : > { %v2600_v9 = vpop.f32.mrf.mxu0  ;;  %v2643_v4 = vpop.f32.mrf.mxu1  ;;  %v5486_v20 = vld [vmem:[%s7356_s8 + $0x31c] ss:$28 sps:$4 sm:$0xff]  }
 0x35d   : > { %v2601_v27 = vadd.f32 %v2600_v9, %v2387_v14  ;;  %v2644_v30 = vadd.f32 %v2643_v4, %v2395_v15  ;;  %v2650_v31 = vmax.f32 %v2599_v23, 0.0  ;;  %v2652_v32 = vmax.f32 %v2642_v24, 0.0  ;;  %v5472_v14 = vld [vmem:[%s7356_s8 + $0x8] ss:$28 sps:$4 sm:$0xff]   ;;  %v5489_v21 = vld [vmem:[%s7356_s8 + $0x19c] ss:$28 sps:$4 sm:$0xff]  }
 0x35e   : > { %v5475_v15 = vld [vmem:[%s7356_s8 + $0x388] ss:$28 sps:$4 sm:$0xff]   ;;  %v5484_v22 = vld [vmem:[%s7356_s8 + $0x318] ss:$28 sps:$4 sm:$0xff]   ;;  %v5493_v26 = vld [vmem:[%s7356_s8 + $0x160] ss:$28 sps:$4 sm:$0xff]  }
 0x35f   : > { %v2651_v35 = vmax.f32 %v2601_v27, 0.0  ;;  %v2653_v36 = vmax.f32 %v2644_v30, 0.0  ;;  %v6869_v45 = vpack.c.bf16 %v2650_v31, %v2646_v37  ;;  %v6871_v46 = vpack.c.bf16 %v2652_v32, %v2648_v38  ;;  %v5487_v51 = vld [vmem:[%s7356_s8 + $0x198] ss:$28 sps:$4 sm:$0xff]   ;;  %v5492_v23 = vld [vmem:[%s7356_s8 + $0x2e4] ss:$28 sps:$4 sm:$0xff]  }
 0x360   : > { %v5495_v24 = vld [vmem:[%s7356_s8 + $0x164] ss:$28 sps:$4 sm:$0xff]   ;;  %v5498_v9 = vld [vmem:[%s7356_s8 + $0x2ac] ss:$28 sps:$4 sm:$0xff]   ;;  %v5504_v31 = vld [vmem:[%s7356_s8 + $0x274] ss:$28 sps:$4 sm:$0xff]  }
 0x361   : > { %v6859_v39 = vpack.c.bf16 %v2651_v35, %v2647_v33  ;;  %v6861_v40 = vpack.c.bf16 %v2653_v36, %v2649_v34  ;;  %v5501_v4 = vld [vmem:[%s7356_s8 + $0x12c] ss:$28 sps:$4 sm:$0xff]   ;;  %v5507_v32 = vld [vmem:[%s7356_s8 + $0xf4] ss:$28 sps:$4 sm:$0xff]   ;;  %v5510_v35 = vld [vmem:[%s7356_s8 + $0x23c] ss:$28 sps:$4 sm:$0xff]  }
 0x362   : > { %v5496_v27 = vld [vmem:[%s7356_s8 + $0x2a8] ss:$28 sps:$4 sm:$0xff]   ;;  %v5502_v33 = vld [vmem:[%s7356_s8 + $0x270] ss:$28 sps:$4 sm:$0xff]   ;;  %v5513_v36 = vld [vmem:[%s7356_s8 + $0xbc] ss:$28 sps:$4 sm:$0xff]  }
 0x363   : > { %3830 = vmatprep.mubr.bf16.mxu0 %v6859_v39  ;;  %4849 = vmatprep.mubr.msk.bf16.mxu1 %vm1669_vm0, %v6861_v40  ;;  %v5499_v30 = vld [vmem:[%s7356_s8 + $0x128] ss:$28 sps:$4 sm:$0xff]   ;;  %v5505_v34 = vld [vmem:[%s7356_s8 + $0xf0] ss:$28 sps:$4 sm:$0xff]   ;;  %v5508_v37 = vld [vmem:[%s7356_s8 + $0x238] ss:$28 sps:$4 sm:$0xff]  }
 0x364   : > { %3831 = vmatmul.mubr.bf16.vlgmr.msra.gmra.mxu0 %v6869_v45  ;;  %3874 = vmatmul.mubr.bf16.vlgmr.msra.gmra.mxu1 %v6871_v46  ;;  %v5511_v38 = vld [vmem:[%s7356_s8 + $0xb8] ss:$28 sps:$4 sm:$0xff]  }
 0x365   : > { %3885 = vmatpush1.bf16.msra.mxu1 %v5430_v41  ;;  %3928 = vmatpush1.bf16.msra.mxu0 %v5433_v43  ;;  %v5516_v41 = vld [vmem:[%s7356_s8 + $0x204] ss:$28 sps:$4 sm:$0xff]  }
 0x366   : > { %3916 = vmatprep.mubr.bf16.mxu1 %v6859_v39  ;;  %4850 = vmatprep.mubr.msk.bf16.mxu0 %vm1669_vm0, %v6861_v40  ;;  %v5519_v43 = vld [vmem:[%s7356_s8 + $0x84] ss:$28 sps:$4 sm:$0xff]  }
 0x367   : > { %3886 = vmatprep.subr.bf16.mxu1 %v5438_v49  ;;  %3929 = vmatprep.subr.bf16.mxu0 %v5441_v52  ;;  %v5514_v49 = vld [vmem:[%s7356_s8 + $0x200] ss:$28 sps:$4 sm:$0xff]  }
 0x368   : > { %v5517_v52 = vld [vmem:[%s7356_s8 + $0x80] ss:$28 sps:$4 sm:$0xff]  }
 0x369   : > { %3887 = vmatpush1.bf16.msra.mxu1 %v5436_v53  ;;  %3930 = vmatpush1.bf16.msra.mxu0 %v5439_v54  ;;  %v5522_v53 = vld [vmem:[%s7356_s8 + $0x1cc] ss:$28 sps:$4 sm:$0xff]  }
 0x36a   : > { %3888 = vmatprep.subr.bf16.mxu1 %v5444_v55  ;;  %3931 = vmatprep.subr.bf16.mxu0 %v5447_v56  ;;  %v5525_v54 = vld [vmem:[%s7356_s8 + $0x4c] ss:$28 sps:$4 sm:$0xff]  }
 0x36b   : > { %v5520_v55 = vld [vmem:[%s7356_s8 + $0x1c8] ss:$28 sps:$4 sm:$0xff]  }
 0x36c   : > { %v5523_v56 = vld [vmem:[%s7356_s8 + $0x48] ss:$28 sps:$4 sm:$0xff]  }
 0x36d   : > { %3889 = vmatpush1.bf16.msra.mxu1 %v5442_v57  ;;  %3932 = vmatpush1.bf16.msra.mxu0 %v5445_v58  ;;  %v5528_v57 = vld [vmem:[%s7356_s8 + $0x14] ss:$28 sps:$4 sm:$0xff]   ;;  %v5531_v58 = vld [vmem:[%s7356_s8 + $0x51c] ss:$28 sps:$4 sm:$0xff]  }
 0x36e   : > { %3890 = vmatprep.subr.bf16.mxu1 %v5450_v59  ;;  %3933 = vmatprep.subr.bf16.mxu0 %v5453_v50  ;;  %v5526_v59 = vld [vmem:[%s7356_s8 + $0x10] ss:$28 sps:$4 sm:$0xff]   ;;  %v5529_v50 = vld [vmem:[%s7356_s8 + $0x518] ss:$28 sps:$4 sm:$0xff]  }
 0x371   : > { %3891 = vmatpush1.bf16.msra.mxu1 %v5448_v60  ;;  %3934 = vmatpush1.bf16.msra.mxu0 %v5451_v61  ;;  %v5534_v60 = vld [vmem:[%s7356_s8 + $0x35c] ss:$28 sps:$4 sm:$0xff]   ;;  %v5537_v61 = vld [vmem:[%s7356_s8 + $0x4e4] ss:$28 sps:$4 sm:$0xff]  }
 0x372   : > { %3892 = vmatprep.subr.bf16.mxu1 %v5456_v62  ;;  %3935 = vmatprep.subr.bf16.mxu0 %v5459_v63  ;;  %v5532_v62 = vld [vmem:[%s7356_s8 + $0x358] ss:$28 sps:$4 sm:$0xff]   ;;  %v5535_v63 = vld [vmem:[%s7356_s8 + $0x4e0] ss:$28 sps:$4 sm:$0xff]  }
 0x375   : > { %3893 = vmatpush1.bf16.msra.mxu1 %v5454_v0  ;;  %3936 = vmatpush1.bf16.msra.mxu0 %v5457_v1  ;;  %v5540_v0 = vld [vmem:[%s7356_s8 + $0x324] ss:$28 sps:$4 sm:$0xff]   ;;  %v5543_v1 = vld [vmem:[%s7356_s8 + $0x4ac] ss:$28 sps:$4 sm:$0xff]  }
 0x376   : > { %3894 = vmatprep.subr.bf16.mxu1 %v5462_v2  ;;  %3937 = vmatprep.subr.bf16.mxu0 %v5465_v42  ;;  %v5538_v2 = vld [vmem:[%s7356_s8 + $0x320] ss:$28 sps:$4 sm:$0xff]   ;;  %v5541_v42 = vld [vmem:[%s7356_s8 + $0x4a8] ss:$28 sps:$4 sm:$0xff]  }
 0x379   : > { %3895 = vmatpush1.bf16.msra.mxu1 %v5460_v3  ;;  %3938 = vmatpush1.bf16.msra.mxu0 %v5463_v5  ;;  %v5546_v3 = vld [vmem:[%s7356_s8 + $0x2ec] ss:$28 sps:$4 sm:$0xff]   ;;  %v5549_v5 = vld [vmem:[%s7356_s8 + $0x474] ss:$28 sps:$4 sm:$0xff]  }
 0x37a   : > { %3896 = vmatprep.subr.bf16.mxu1 %v5468_v6  ;;  %3939 = vmatprep.subr.bf16.mxu0 %v5471_v7  ;;  %v5544_v6 = vld [vmem:[%s7356_s8 + $0x2e8] ss:$28 sps:$4 sm:$0xff]   ;;  %v5547_v7 = vld [vmem:[%s7356_s8 + $0x470] ss:$28 sps:$4 sm:$0xff]  }
 0x37d   : > { %3897 = vmatpush1.bf16.msra.mxu1 %v5466_v8  ;;  %3940 = vmatpush1.bf16.msra.mxu0 %v5469_v10  ;;  %v5552_v8 = vld [vmem:[%s7356_s8 + $0x2b4] ss:$28 sps:$4 sm:$0xff]   ;;  %v5555_v10 = vld [vmem:[%s7356_s8 + $0x43c] ss:$28 sps:$4 sm:$0xff]  }
 0x37e   : > { %3898 = vmatprep.subr.bf16.mxu1 %v5474_v12  ;;  %3941 = vmatprep.subr.bf16.mxu0 %v5477_v13  ;;  %v5550_v12 = vld [vmem:[%s7356_s8 + $0x2b0] ss:$28 sps:$4 sm:$0xff]   ;;  %v5553_v13 = vld [vmem:[%s7356_s8 + $0x438] ss:$28 sps:$4 sm:$0xff]  }
 0x381   : > { %3899 = vmatpush1.bf16.msra.mxu1 %v5472_v14  ;;  %3942 = vmatpush1.bf16.msra.mxu0 %v5475_v15  ;;  %v5558_v14 = vld [vmem:[%s7356_s8 + $0x27c] ss:$28 sps:$4 sm:$0xff]   ;;  %v5561_v15 = vld [vmem:[%s7356_s8 + $0x404] ss:$28 sps:$4 sm:$0xff]  }
 0x382   : > { %3900 = vmatprep.subr.bf16.mxu1 %v5480_v16  ;;  %3957 = vmatprep.subr.bf16.mxu0 %v5483_v17  ;;  %v5556_v16 = vld [vmem:[%s7356_s8 + $0x278] ss:$28 sps:$4 sm:$0xff]   ;;  %v5559_v17 = vld [vmem:[%s7356_s8 + $0x400] ss:$28 sps:$4 sm:$0xff]  }
 0x385   : > { %3901 = vmatpush2.bf16.msra.mxu1 %v5478_v18  ;;  %3958 = vmatpush2.bf16.msra.mxu0 %v5481_v19  ;;  %v5564_v18 = vld [vmem:[%s7356_s8 + $0x244] ss:$28 sps:$4 sm:$0xff]   ;;  %v5567_v19 = vld [vmem:[%s7356_s8 + $0x3cc] ss:$28 sps:$4 sm:$0xff]  }
 0x386   : > { %3902 = vmatprep.subr.bf16.mxu1 %v5486_v20  ;;  %3970 = vmatprep.subr.bf16.mxu0 %v5489_v21  ;;  %v5562_v20 = vld [vmem:[%s7356_s8 + $0x240] ss:$28 sps:$4 sm:$0xff]   ;;  %v5565_v21 = vld [vmem:[%s7356_s8 + $0x3c8] ss:$28 sps:$4 sm:$0xff]  }
 0x388   : > { %3960 = vmatmul.mubr.bf16.vlgmr.msra.gmra.mxu0 %v6871_v46 }
 0x389   : > { %3903 = vmatpush2.bf16.msra.mxu1 %v5484_v22  ;;  %3971 = vmatpush1.bf16.msra.mxu0 %v5487_v51  ;;  %v5570_v22 = vld [vmem:[%s7356_s8 + $0x20c] ss:$28 sps:$4 sm:$0xff]   ;;  %v5573_v51 = vld [vmem:[%s7356_s8 + $0x394] ss:$28 sps:$4 sm:$0xff]  }
 0x38a   : > { %4002 = vmatprep.mubr.bf16.mxu0 %v6859_v39  ;;  %3904 = vmatprep.subr.bf16.mxu1 %v5492_v23  ;;  %v5568_v23 = vld [vmem:[%s7356_s8 + $0x208] ss:$28 sps:$4 sm:$0xff]  }
 0x38b   : > { %3972 = vmatprep.subr.bf16.mxu0 %v5495_v24  ;;  %v5571_v24 = vld [vmem:[%s7356_s8 + $0x390] ss:$28 sps:$4 sm:$0xff]  }
 0x38d   : > { %3905 = vmatpush2.bf16.msra.mxu1 %v5490_v25  ;;  %3973 = vmatpush1.bf16.msra.mxu0 %v5493_v26  ;;  %v5576_v25 = vld [vmem:[%s7356_s8 + $0x1d4] ss:$28 sps:$4 sm:$0xff]  }
 0x38e   : > { %3906 = vmatprep.subr.bf16.mxu1 %v5498_v9  ;;  %3974 = vmatprep.subr.bf16.mxu0 %v5501_v4  ;;  %v5579_v26 = vld [vmem:[%s7356_s8 + $0x554] ss:$28 sps:$4 sm:$0xff]  }
 0x38f   : > { %v5574_v9 = vld [vmem:[%s7356_s8 + $0x1d0] ss:$28 sps:$4 sm:$0xff]  }
 0x390   : > { %v5577_v4 = vld [vmem:[%s7356_s8 + $0x550] ss:$28 sps:$4 sm:$0xff]  }
 0x391   : > { %3907 = vmatpush2.bf16.msra.mxu1 %v5496_v27  ;;  %3975 = vmatpush1.bf16.msra.mxu0 %v5499_v30  ;;  %v5580_v27 = vld [vmem:[%s7356_s8 + $0x360] ss:$28 sps:$4 sm:$0xff]  }
 0x392   : > { %3908 = vmatprep.subr.bf16.mxu1 %v5504_v31  ;;  %3976 = vmatprep.subr.bf16.mxu0 %v5507_v32  ;;  %v5581_v30 = vld [vmem:[%s7356_s8 + $0x1a0] ss:$28 sps:$4 sm:$0xff]   ;;  %v5583_v32 = vld [vmem:[%s7356_s8 + $0x328] ss:$28 sps:$4 sm:$0xff]  }
 0x393   : > { %v5582_v31 = vld [vmem:[%s7356_s8 + $0x520] ss:$28 sps:$4 sm:$0xff]  }
 0x395   : > { %3909 = vmatpush2.bf16.msra.mxu1 %v5502_v33  ;;  %3977 = vmatpush1.bf16.msra.mxu0 %v5505_v34  ;;  %v5584_v33 = vld [vmem:[%s7356_s8 + $0x168] ss:$28 sps:$4 sm:$0xff]  }
 0x396   : > { %3910 = vmatprep.subr.bf16.mxu1 %v5510_v35  ;;  %3978 = vmatprep.subr.bf16.mxu0 %v5513_v36  ;;  %v5585_v34 = vld [vmem:[%s7356_s8 + $0x4e8] ss:$28 sps:$4 sm:$0xff]   ;;  %v5586_v35 = vld [vmem:[%s7356_s8 + $0x2f0] ss:$28 sps:$4 sm:$0xff]   ;;  %v5589_v36 = vld [vmem:[%s7356_s8 + $0x2b8] ss:$28 sps:$4 sm:$0xff]  }
 0x399   : > { %3911 = vmatpush2.bf16.msra.mxu1 %v5508_v37  ;;  %3979 = vmatpush1.bf16.msra.mxu0 %v5511_v38  ;;  %v5590_v37 = vld [vmem:[%s7356_s8 + $0xf8] ss:$28 sps:$4 sm:$0xff]  }
 0x39a   : > { %3912 = vmatprep.subr.bf16.mxu1 %v5516_v41  ;;  %3980 = vmatprep.subr.bf16.mxu0 %v5519_v43  ;;  %v5591_v38 = vld [vmem:[%s7356_s8 + $0x478] ss:$28 sps:$4 sm:$0xff]   ;;  %v5592_v41 = vld [vmem:[%s7356_s8 + $0x280] ss:$28 sps:$4 sm:$0xff]  }
 0x39b   : > { %v5593_v43 = vld [vmem:[%s7356_s8 + $0xc0] ss:$28 sps:$4 sm:$0xff]  }
 0x39d   : > { %3913 = vmatpush2.bf16.msra.mxu1 %v5514_v49  ;;  %3981 = vmatpush1.bf16.msra.mxu0 %v5517_v52  ;;  %v5594_v49 = vld [vmem:[%s7356_s8 + $0x440] ss:$28 sps:$4 sm:$0xff]   ;;  %v5595_v52 = vld [vmem:[%s7356_s8 + $0x248] ss:$28 sps:$4 sm:$0xff]  }
 0x39e   : > { %3914 = vmatprep.subr.bf16.mxu1 %v5522_v53  ;;  %3982 = vmatprep.subr.bf16.mxu0 %v5525_v54  ;;  %v5596_v53 = vld [vmem:[%s7356_s8 + $0x88] ss:$28 sps:$4 sm:$0xff]  }
 0x39f   : > { %v5597_v54 = vld [vmem:[%s7356_s8 + $0x408] ss:$28 sps:$4 sm:$0xff]  }
 0x3a1   : > { %3915 = vmatpush2.bf16.msra.mxu1 %v5520_v55  ;;  %3983 = vmatpush1.bf16.msra.mxu0 %v5523_v56  ;;  %v5598_v55 = vld [vmem:[%s7356_s8 + $0x210] ss:$28 sps:$4 sm:$0xff]  }
 0x3a2   : > { %3984 = vmatprep.subr.bf16.mxu0 %v5528_v57  ;;  %4013 = vmatprep.subr.bf16.mxu1 %v5531_v58  ;;  %v5599_v56 = vld [vmem:[%s7356_s8 + $0x50] ss:$28 sps:$4 sm:$0xff]   ;;  %v5601_v58 = vld [vmem:[%s7356_s8 + $0x1d8] ss:$28 sps:$4 sm:$0xff]  }
 0x3a3   : > { %v5600_v57 = vld [vmem:[%s7356_s8 + $0x3d0] ss:$28 sps:$4 sm:$0xff]  }
 0x3a4   : > { %3917 = vmatmul.mubr.bf16.vlgmr.msra.gmra.mxu1 %v6869_v45 }
 0x3a5   : > { %3985 = vmatpush1.bf16.msra.mxu0 %v5526_v59  ;;  %4014 = vmatpush1.bf16.msra.mxu1 %v5529_v50  ;;  %v5602_v59 = vld [vmem:[%s7356_s8 + $0x18] ss:$28 sps:$4 sm:$0xff]  }
 0x3a6   : > { %4851 = vmatprep.mubr.msk.bf16.mxu1 %vm1669_vm0, %v6861_v40  ;;  %3986 = vmatprep.subr.bf16.mxu0 %v5534_v60  ;;  %v5603_v50 = vld [vmem:[%s7356_s8 + $0x398] ss:$28 sps:$4 sm:$0xff]  }
 0x3a7   : > { %4015 = vmatprep.subr.bf16.mxu1 %v5537_v61  ;;  %v5604_v60 = vld [vmem:[%s7356_s8 + $0x558] ss:$28 sps:$4 sm:$0xff]   ;;  %v7268_v61 = vld [vmem:[%s7357_s9] sm:$0x7f] }
 0x3a9   : > { %3987 = vmatpush2.bf16.msra.mxu0 %v5532_v62  ;;  %4016 = vmatpush1.bf16.msra.mxu1 %v5535_v63  ;;  %v2863_v62 = vrot.slane %v7268_v61, %v6563_v48  ;;  %v2867_v63 = vrot.slane %v7268_v61, %v6560_v47 }
 0x3aa   : > { %3988 = vmatprep.subr.bf16.mxu0 %v5540_v0  ;;  %4017 = vmatprep.subr.bf16.mxu1 %v5543_v1 }
 0x3ad   : > { %3989 = vmatpush2.bf16.msra.mxu0 %v5538_v2  ;;  %4018 = vmatpush1.bf16.msra.mxu1 %v5541_v42 }
 0x3ae   : > { %3990 = vmatprep.subr.bf16.mxu0 %v5546_v3  ;;  %4019 = vmatprep.subr.bf16.mxu1 %v5549_v5 }
 0x3b1   : > { %3991 = vmatpush2.bf16.msra.mxu0 %v5544_v6  ;;  %4020 = vmatpush1.bf16.msra.mxu1 %v5547_v7 }
 0x3b2   : > { %3992 = vmatprep.subr.bf16.mxu0 %v5552_v8  ;;  %4021 = vmatprep.subr.bf16.mxu1 %v5555_v10 }
 0x3b5   : > { %3993 = vmatpush2.bf16.msra.mxu0 %v5550_v12  ;;  %4022 = vmatpush1.bf16.msra.mxu1 %v5553_v13 }
 0x3b6   : > { %3994 = vmatprep.subr.bf16.mxu0 %v5558_v14  ;;  %4023 = vmatprep.subr.bf16.mxu1 %v5561_v15 }
 0x3b9   : > { %3995 = vmatpush2.bf16.msra.mxu0 %v5556_v16  ;;  %4024 = vmatpush1.bf16.msra.mxu1 %v5559_v17 }
 0x3ba   : > { %3996 = vmatprep.subr.bf16.mxu0 %v5564_v18  ;;  %4025 = vmatprep.subr.bf16.mxu1 %v5567_v19 }
 0x3bd   : > { %3997 = vmatpush2.bf16.msra.mxu0 %v5562_v20  ;;  %4026 = vmatpush1.bf16.msra.mxu1 %v5565_v21 }
 0x3be   : > { %3998 = vmatprep.subr.bf16.mxu0 %v5570_v22  ;;  %4027 = vmatprep.subr.bf16.mxu1 %v5573_v51 }
 0x3c1   : > { %3999 = vmatpush2.bf16.msra.mxu0 %v5568_v23  ;;  %4028 = vmatpush1.bf16.msra.mxu1 %v5571_v24 }
 0x3c2   : > { %4000 = vmatprep.subr.bf16.mxu0 %v5576_v25  ;;  %4043 = vmatprep.subr.bf16.mxu1 %v5579_v26 }
 0x3c5   : > { %4001 = vmatpush2.bf16.msra.mxu0 %v5574_v9  ;;  %4044 = vmatpush2.bf16.msra.mxu1 %v5577_v4 }
 0x3c6   : > { %4910 = vmatprep.subr.bf16.mxu1 %v5580_v27  ;;  %4097 = vmatprep.subr.bf16.mxu0 %v5729_v11 }
 0x3c8   : > { %4003 = vmatmul.mubr.bf16.vlgmr.msra.gmra.mxu0 %v6869_v45  ;;  %4046 = vmatmul.mubr.bf16.vlgmr.msra.gmra.mxu1 %v6871_v46 }
 0x3c9   : > { %4911 = vmatpush3.bf16.msra.mxu1 %v5581_v30  ;;  %4088 = vmatprep.mubr.bf16.mxu1 %v6859_v39  ;;  %v5587_v39 = vld [vmem:[%s7356_s8 + $0x130] ss:$28 sps:$4 sm:$0xff]  }
 0x3ca   : > { %4098 = vmatpush1.bf16.msra.mxu0 %v5582_v31  ;;  %4852 = vmatprep.mubr.msk.bf16.mxu0 %vm1669_vm0, %v6861_v40  ;;  %v5588_v40 = vld [vmem:[%s7356_s8 + $0x4b0] ss:$28 sps:$4 sm:$0xff]   ;;  %v2871_v31 = vrot.slane %v7268_v61, %v6575_v29 }
 0x3cb   : > { %4912 = vmatprep.subr.bf16.mxu1 %v5583_v32  ;;  %4099 = vmatprep.subr.bf16.mxu0 %v5729_v11  ;;  %v2875_v32 = vrot.slane %v7268_v61, %v6572_v28 }
 0x3cd   : > { %4913 = vmatpush3.bf16.msra.mxu1 %v5584_v33 }
 0x3ce   : > { %4100 = vmatpush1.bf16.msra.mxu0 %v5585_v34  ;;  %4914 = vmatprep.subr.bf16.mxu1 %v5586_v35 }
 0x3cf   : > { %4101 = vmatprep.subr.bf16.mxu0 %v5729_v11 }
 0x3d1   : > { %4915 = vmatpush3.bf16.msra.mxu1 %v5587_v39 }
 0x3d2   : > { %4102 = vmatpush1.bf16.msra.mxu0 %v5588_v40  ;;  %4916 = vmatprep.subr.bf16.mxu1 %v5589_v36 }
 0x3d3   : > { %4103 = vmatprep.subr.bf16.mxu0 %v5729_v11 }
 0x3d5   : > { %4917 = vmatpush3.bf16.msra.mxu1 %v5590_v37 }
 0x3d6   : > { %4104 = vmatpush1.bf16.msra.mxu0 %v5591_v38  ;;  %4918 = vmatprep.subr.bf16.mxu1 %v5592_v41 }
 0x3d7   : > { %4105 = vmatprep.subr.bf16.mxu0 %v5729_v11 }
 0x3d9   : > { %4919 = vmatpush3.bf16.msra.mxu1 %v5593_v43 }
 0x3da   : > { %4106 = vmatpush1.bf16.msra.mxu0 %v5594_v49  ;;  %4920 = vmatprep.subr.bf16.mxu1 %v5595_v52 }
 0x3db   : > { %4107 = vmatprep.subr.bf16.mxu0 %v5729_v11 }
 0x3dd   : > { %4921 = vmatpush3.bf16.msra.mxu1 %v5596_v53 }
 0x3de   : > { %4108 = vmatpush1.bf16.msra.mxu0 %v5597_v54  ;;  %4922 = vmatprep.subr.bf16.mxu1 %v5598_v55 }
 0x3df   : > { %4109 = vmatprep.subr.bf16.mxu0 %v5729_v11 }
 0x3e1   : > { %4923 = vmatpush3.bf16.msra.mxu1 %v5599_v56 }
 0x3e2   : > { %4110 = vmatpush1.bf16.msra.mxu0 %v5600_v57  ;;  %4924 = vmatprep.subr.bf16.mxu1 %v5601_v58 }
 0x3e3   : > { %4111 = vmatprep.subr.bf16.mxu0 %v5729_v11 }
 0x3e5   : > { %4925 = vmatpush3.bf16.msra.mxu1 %v5602_v59 }
 0x3e6   : > { %4112 = vmatpush1.bf16.msra.mxu0 %v5603_v50 }
 0x3e7   : > { %4127 = vmatprep.subr.bf16.mxu0 %v5729_v11 }
 0x3e8   : > { %4089 = vmatmul.mubr.bf16.vlgmr.msra.gmra.mxu1 %v6869_v45 }
 0x3ea   : > { %4128 = vmatpush2.bf16.msra.mxu0 %v5604_v60 }
 0x3ed   : > { %4130 = vmatmul.mubr.bf16.vlgmr.msra.gmra.mxu0 %v6871_v46 }
 0x424   : > { %v3832_v0 = vpop.f32.mrf.mxu0  ;;  %v3875_v1 = vpop.f32.mrf.mxu1 }
 0x425   : > { %v3833_v2 = vadd.f32 %v3832_v0, %v2863_v62 }
 0x426   : > { %v3834_v11 = vpop.f32.mrf.mxu0  ;;  %v3877_v42 = vpop.f32.mrf.mxu1 }
 0x427   : > { %v3876_v45 = vadd.f32 %v3875_v1, %v3833_v2  ;;  %v3835_v3 = vadd.f32 %v3834_v11, %v2867_v63  ;;  %v2878_v2 = vsub.s32 4, %v6557_v44  ;;  %v2882_v11 = vsub.s32 5, %v6557_v44 }
 0x428   : > { %v3836_v5 = vpop.f32.mrf.mxu0  ;;  %v3879_v46 = vpop.f32.mrf.mxu1 }
 0x429   : > { %v4853_v6 = vmul.f32 -1.442695, %v3876_v45  ;;  %v3878_v7 = vadd.f32 %v3877_v42, %v3835_v3  ;;  %v3837_v8 = vadd.f32 %v3836_v5, %v2863_v62  ;;  %v2879_v42 = vrot.slane %v7268_v61, %v2878_v2 }
 0x42a   : > { %v3838_v10 = vpop.f32.mrf.mxu0  ;;  %v3881_v14 = vpop.f32.mrf.mxu1  ;;  %v2883_v45 = vrot.slane %v7268_v61, %v2882_v11 }
 0x42b   : > { %5609 = vpow2.f32 %v4853_v6  ;;  %v4854_v12 = vmul.f32 -1.442695, %v3878_v7  ;;  %v3880_v13 = vadd.f32 %v3879_v46, %v3837_v8  ;;  %v3839_v48 = vadd.f32 %v3838_v10, %v2867_v63 }
 0x42d   : > { %5611 = vpow2.f32 %v4854_v12  ;;  %v4860_v47 = vmul.f32 -1.442695, %v3880_v13  ;;  %v3882_v15 = vadd.f32 %v3881_v14, %v3839_v48 }
 0x42f   : > { %5613 = vpow2.f32 %v4860_v47  ;;  %v4861_v16 = vmul.f32 -1.442695, %v3882_v15 }
 0x431   : > { %5615 = vpow2.f32 %v4861_v16 }
 0x438   : > { %v5610_v17 = vpop.eup %5609 }
 0x439   : > { %v4180_v18 = vadd.f32 1.0, %v5610_v17 }
 0x43a   : > { %v5612_v19 = vpop.eup %5611 }
 0x43b   : > { %v4181_v20 = vadd.f32 1.0, %v5612_v19  ;;  %5617 = vrcp.f32 %v4180_v18 }
 0x43c   : > { %v5614_v21 = vpop.eup %5613 }
 0x43d   : > { %5619 = vrcp.f32 %v4181_v20  ;;  %v4187_v22 = vadd.f32 1.0, %v5614_v21 }
 0x43e   : > { %v5616_v51 = vpop.eup %5615 }
 0x43f   : > { %v4188_v23 = vadd.f32 1.0, %v5616_v51  ;;  %5621 = vrcp.f32 %v4187_v22 }
 0x441   : > { %5623 = vrcp.f32 %v4188_v23 }
 0x448   : > { %v5618_v24 = vpop.eup %5617  ;;  %v3961_v30 = vpop.f32.mrf.mxu0 }
 0x44a   : > { %v5620_v25 = vpop.eup %5619  ;;  %v3963_v33 = vpop.f32.mrf.mxu0 }
 0x44b   : > { %v4880_v26 = vpack.c.bf16 %v5620_v25, %v5618_v24 }
 0x44c   : > { %v5622_v9 = vpop.eup %5621  ;;  %v3965_v37 = vpop.f32.mrf.mxu0 }
 0x44d   : > { %4266 = vst [vmem:[%s7277_s23] sm:$0xff] %v4880_v26 }
 0x44e   : > { %v5624_v4 = vpop.eup %5623  ;;  %v3967_v29 = vpop.f32.mrf.mxu0 }
 0x44f   : > { %v4884_v27 = vpack.c.bf16 %v5624_v4, %v5622_v9 }
 0x451   : > { %4271 = vst [vmem:[%s7277_s23 + $0x1c] sm:$0xff] %v4884_v27 }
 0x464   : > { %v3918_v34 = vpop.f32.mrf.mxu1 }
 0x465   : > { %v3919_v35 = vadd.f32 %v3918_v34, %v2871_v31 }
 0x466   : > { %v3920_v39 = vpop.f32.mrf.mxu1 }
 0x467   : > { %v3962_v40 = vadd.f32 %v3961_v30, %v3919_v35  ;;  %v3921_v36 = vadd.f32 %v3920_v39, %v2875_v32  ;;  %v2886_v39 = vsub.s32 6, %v6557_v44 }
 0x468   : > { %v3922_v38 = vpop.f32.mrf.mxu1 }
 0x469   : > { %v4855_v41 = vmul.f32 -1.442695, %v3962_v40  ;;  %v3964_v43 = vadd.f32 %v3963_v33, %v3921_v36  ;;  %v3923_v49 = vadd.f32 %v3922_v38, %v2871_v31  ;;  %v2887_v36 = vrot.slane %v7268_v61, %v2886_v39 }
 0x46a   : > { %v3924_v52 = vpop.f32.mrf.mxu1 }
 0x46b   : > { %5625 = vpow2.f32 %v4855_v41  ;;  %v4856_v53 = vmul.f32 -1.442695, %v3964_v43  ;;  %v3966_v54 = vadd.f32 %v3965_v37, %v3923_v49  ;;  %v3925_v55 = vadd.f32 %v3924_v52, %v2875_v32 }
 0x46d   : > { %5627 = vpow2.f32 %v4856_v53  ;;  %v4862_v56 = vmul.f32 -1.442695, %v3966_v54  ;;  %v3968_v28 = vadd.f32 %v3967_v29, %v3925_v55 }
 0x46f   : > { %5629 = vpow2.f32 %v4862_v56  ;;  %v4863_v57 = vmul.f32 -1.442695, %v3968_v28 }
 0x471   : > { %5631 = vpow2.f32 %v4863_v57 }
 0x478   : > { %v5626_v58 = vpop.eup %5625 }
 0x479   : > { %v4182_v59 = vadd.f32 1.0, %v5626_v58 }
 0x47a   : > { %v5628_v50 = vpop.eup %5627 }
 0x47b   : > { %v4183_v60 = vadd.f32 1.0, %v5628_v50  ;;  %5633 = vrcp.f32 %v4182_v59 }
 0x47c   : > { %v5630_v62 = vpop.eup %5629 }
 0x47d   : > { %5635 = vrcp.f32 %v4183_v60  ;;  %v4189_v63 = vadd.f32 1.0, %v5630_v62 }
 0x47e   : > { %v5632_v0 = vpop.eup %5631 }
 0x47f   : > { %v4190_v1 = vadd.f32 1.0, %v5632_v0  ;;  %5637 = vrcp.f32 %v4189_v63 }
 0x481   : > { %5639 = vrcp.f32 %v4190_v1 }
 0x488   : > { %v4004_v3 = vpop.f32.mrf.mxu0  ;;  %v4047_v5 = vpop.f32.mrf.mxu1 }
 0x489   : > { %v5634_v46 = vpop.eup %5633  ;;  %v4005_v6 = vadd.f32 %v4004_v3, %v2879_v42 }
 0x48a   : > { %v5636_v7 = vpop.eup %5635  ;;  %v4006_v8 = vpop.f32.mrf.mxu0 }
 0x48b   : > { %v4049_v10 = vpop.f32.mrf.mxu1  ;;  %v4881_v12 = vpack.c.bf16 %v5636_v7, %v5634_v46  ;;  %v4048_v13 = vadd.f32 %v4047_v5, %v4005_v6  ;;  %v4007_v48 = vadd.f32 %v4006_v8, %v2883_v45 }
 0x48c   : > { %v4008_v14 = vpop.f32.mrf.mxu0  ;;  %v5638_v47 = vpop.eup %5637 }
 0x48d   : > { %4267 = vst [vmem:[%s7277_s23 + $0x8] sm:$0xff] %v4881_v12  ;;  %v4857_v15 = vmul.f32 -1.442695, %v4048_v13  ;;  %v4050_v16 = vadd.f32 %v4049_v10, %v4007_v48  ;;  %v4009_v17 = vadd.f32 %v4008_v14, %v2879_v42  ;;  %v4051_v18 = vpop.f32.mrf.mxu1 }
 0x48e   : > { %v5640_v19 = vpop.eup %5639  ;;  %v4010_v20 = vpop.f32.mrf.mxu0 }
 0x48f   : > { %v4885_v21 = vpack.c.bf16 %v5640_v19, %v5638_v47  ;;  %5641 = vpow2.f32 %v4857_v15  ;;  %v4858_v22 = vmul.f32 -1.442695, %v4050_v16  ;;  %v4052_v51 = vadd.f32 %v4051_v18, %v4009_v17  ;;  %v4053_v25 = vpop.f32.mrf.mxu1 }
 0x490   : > { %v4011_v23 = vadd.f32 %v4010_v20, %v2883_v45 }
 0x491   : > { %4272 = vst [vmem:[%s7277_s23 + $0x24] sm:$0xff] %v4885_v21  ;;  %5643 = vpow2.f32 %v4858_v22  ;;  %v4864_v24 = vmul.f32 -1.442695, %v4052_v51 }
 0x492   : > { %v4054_v26 = vadd.f32 %v4053_v25, %v4011_v23 }
 0x493   : > { %5645 = vpow2.f32 %v4864_v24 }
 0x494   : > { %v4865_v9 = vmul.f32 -1.442695, %v4054_v26 }
 0x496   : > { %5647 = vpow2.f32 %v4865_v9 }
 0x49c   : > { %v5642_v4 = vpop.eup %5641 }
 0x49d   : > { %v4184_v27 = vadd.f32 1.0, %v5642_v4 }
 0x49e   : > { %v5644_v30 = vpop.eup %5643 }
 0x49f   : > { %v4185_v31 = vadd.f32 1.0, %v5644_v30  ;;  %5649 = vrcp.f32 %v4184_v27 }
 0x4a0   : > { %v5646_v32 = vpop.eup %5645 }
 0x4a1   : > { %5651 = vrcp.f32 %v4185_v31  ;;  %v4191_v33 = vadd.f32 1.0, %v5646_v32 }
 0x4a3   : > { %v5648_v34 = vpop.eup %5647  ;;  %5653 = vrcp.f32 %v4191_v33 }
 0x4a4   : > { %v4192_v35 = vadd.f32 1.0, %v5648_v34 }
 0x4a6   : > { %5655 = vrcp.f32 %v4192_v35 }
 0x4a8   : > { %v4926_v40 = vpop.f32.mrf.mxu1 }
 0x4aa   : > { %v4927_v37 = vpop.f32.mrf.mxu1 }
 0x4ab   : > { %v4928_v38 = vadd.f32 %v4927_v37, %v4926_v40 }
 0x4ac   : > { %v4929_v41 = vpop.f32.mrf.mxu1  ;;  %v5650_v43 = vpop.eup %5649 }
 0x4ad   : > { %v4091_v49 = vadd.f32 %v4928_v38, %v2887_v36  ;;  %v4131_v52 = vpop.f32.mrf.mxu0 }
 0x4ae   : > { %v5652_v53 = vpop.eup %5651  ;;  %v4930_v54 = vpop.f32.mrf.mxu1 }
 0x4af   : > { %v4882_v55 = vpack.c.bf16 %v5652_v53, %v5650_v43  ;;  %v4132_v29 = vadd.f32 %v4131_v52, %v4091_v49  ;;  %v4931_v56 = vadd.f32 %v4930_v54, %v4929_v41  ;;  %v4133_v28 = vpop.f32.mrf.mxu0 }
 0x4b0   : > { %v5654_v59 = vpop.eup %5653 }
 0x4b1   : > { %4268 = vst [vmem:[%s7277_s23 + $0x10] sm:$0xff] %v4882_v55  ;;  %v4859_v44 = vmul.f32 -1.442695, %v4132_v29  ;;  %v4094_v57 = vadd.f32 %v4931_v56, %v2887_v36  ;;  %v4134_v58 = vpop.f32.mrf.mxu0 }
 0x4b3   : > { %v5656_v50 = vpop.eup %5655  ;;  %5657 = vpow2.f32 %v4859_v44  ;;  %v4135_v61 = vadd.f32 %v4134_v58, %v4094_v57  ;;  %v4136_v60 = vpop.f32.mrf.mxu0 }
 0x4b4   : > { %v4886_v62 = vpack.c.bf16 %v5656_v50, %v5654_v59 }
 0x4b5   : > { %v4866_v63 = vmul.f32 -1.442695, %v4135_v61 }
 0x4b6   : > { %4273 = vst [vmem:[%s7277_s23 + $0x2c] sm:$0xff] %v4886_v62 }
 0x4b7   : > { %5659 = vpow2.f32 %v4866_v63 }
 0x4c0   : > { %v5658_v0 = vpop.eup %5657 }
 0x4c1   : > { %v4186_v1 = vadd.f32 1.0, %v5658_v0 }
 0x4c3   : > { %5661 = vrcp.f32 %v4186_v1 }
 0x4c4   : > { %v5660_v2 = vpop.eup %5659 }
 0x4c5   : > { %v4193_v11 = vadd.f32 1.0, %v5660_v2 }
 0x4c7   : > { %5663 = vrcp.f32 %v4193_v11 }
 0x4d0   : > { %v5662_v42 = vpop.eup %5661 }
 0x4d1   : > { %v4883_v45 = vpack.c.bf16 %v5662_v42, %v5662_v42 }
 0x4d3   : > { %4270 = vst.msk [vmem:[%s7277_s23 + $0x18] sm:$0xf] %vm4269_vm3, %v4883_v45 }
 0x4d4   : > { %v5664_v3 = vpop.eup %5663 }
 0x4d5   : > { %v4887_v5 = vpack.c.bf16 %v5664_v3, %v5664_v3 }
 0x4d7   : > { %4274 = vst.msk [vmem:[%s7277_s23 + $0x34] sm:$0xf] %vm4269_vm3, %v4887_v5 }
 0x4d8   : > { %5680 = shalt.err (!%p5677_p3)
}
 0x4d9   : > { %s5681_s0 = scalar_lea.hbm %s7301_s25, 896  ;;  %s5685_s24 = scalar_lea.hbm %s7358_s10, 1792 }
 0x4da   : > { %p5682_p4 = scmp.ne.s32.totalorder %s7301_s25, %s5681_s0  ;;  %p5686_p9 = scmp.lt.s32.totalorder %s7301_s25, %s7358_s10 }
 0x4db   : > { %p5687_p10 = scmp.lt.s32.totalorder %s5685_s24, %s5681_s0 }
 0x4dc   : > { %p5683_p7 = pnand %p5682_p4, %p5832_p5 }
 0x4dd   : > { %p5688_p11 = por %p5687_p10, %p5686_p9 }
 0x4de   : > { %p5684_p8 = pneg %p5683_p7 }
 0x4e0   : > { %p5689_p12 = pnand %p5688_p11, %p5684_p8 }
 0x4e2   : > { %5692 = shalt.err (!%p5689_p12)
}
 0x4e3   : > { %s5732_s22 = smov 448   ;;  %s5733_s26 = smov 28  }
 0x4e4   : > { %4935 = dma.vmem_to_hbm [thread:$0]  (%p5832_p5), %s7303_s16, 896, %s7301_s25, %s7308_s13, %s5732_s22, %s5732_s22, %s5733_s26  }
 0x4e5 PF: > { %p4941_p13 = scmp.ge.s32.totalorder %s5727_s20, 2  ;;  %s4316_s21 = sand.u32 1, %s5715_s17  }
 0x4e6   : > { %s4317_s30 = scalar_lea.sflag [#allocation4], %s4316_s21 }
 0x4e7   : > { %p4938_p0 = pnand %p4941_p13, %p5836_p6 }
 0x4e9   : > { %p4939_p1 = pneg %p4938_p0 }
 0x4eb   : > { %5710 = dma.done.wait (%p4939_p1), %s4317_s30, 896  }
 0x4ec   : > { %5712 = vsyncadd (%p4939_p1), %s4317_s30, 4294966400  ;;  %s7370_s20 = sld [smem:[#allocation7_spill]]  ;;  %s7373_s17 = smov %s5719_s18 }
 0x4ed   : > { %s7371_s12 = sld [smem:[#allocation6_spill]] }
 0x4ee   : > { %s7372_s19 = sld [smem:[#allocation8_spill]] }
 0x4f2   : > { %p22_p2 = scmp.ge.s32.totalorder %s7370_s20, 4  }
 0x4f3   : > { %s7374_s18 = smov %s7371_s12 }
 0x4f4   :  { %24 = sbr.rel (!%p22_p2) target bundleno = 5 (0x5), region = 110 }
 0x4f9   :  { %4330 = vsyncpa [#allocation4], 1 }
 0x4fa   :  { %4332 = vsyncpa [#allocation4 + $0x1], 1 }

</bundles_post_ra>
